<compile_context>
chip_gen: v5e
topology: v5e:2x2
jax: 0.10.0
libtpu: 0.0.40
codegen_flags: <defaults>
</compile_context>

<pallas_src>
import functools

import numpy as np
import jax
import jax.numpy as jnp
from jax import lax
from jax.experimental import pallas as pl
from jax.experimental.pallas import tpu as pltpu

LN_EPS = 1e-5  # F.layer_norm default


def _layer_norm(v):
    mu = jnp.mean(v, axis=-1, keepdims=True)
    d = v - mu
    var = jnp.mean(d * d, axis=-1, keepdims=True)
    return d * lax.rsqrt(var + LN_EPS)


# ---------------------------------------------------------------------------
# Fused Graphormer forward kernel
# ---------------------------------------------------------------------------
def _graphormer_kernel(x_ref, keep_ref, cent_ref, bmat_ref, mask_ref, sel_ref,
                       w0_ref, b0_ref, w1_ref, b1_ref,
                       wqkv_ref, bqkv_ref, wo_ref, bo_ref,
                       wff1_ref, bff1_ref, wff2_ref, bff2_ref,
                       out_ref, *, num_layers, num_heads, dim_k, hidden):
    f32 = jnp.float32

    # ---- init_proj: Linear -> ReLU -> Linear (virtual rows forced to zero) ----
    h = jnp.dot(x_ref[...], w0_ref[...], preferred_element_type=f32) + b0_ref[...]
    h = jnp.maximum(h, 0.0)
    h = jnp.dot(h, w1_ref[...], preferred_element_type=f32) + b1_ref[...]
    h = h * keep_ref[...]            # virtual_node_init = zeros
    h = h + cent_ref[...]            # centrality encoding (embedding gathered in wrapper)

    bmat = bmat_ref[...]             # [N, N] distance biases
    mask = mask_ref[...] > 0.0       # [N, N] same-graph attention mask
    scale = f32(1.0 / (dim_k ** 0.5))
    neg = f32(-1e30)

    for l in range(num_layers):      # static unroll (tiny L)
        # ------------------- multi-head attention -------------------
        hn = _layer_norm(h)
        # fused Q|K|V projection for all heads: one MXU matmul
        qkv = jnp.dot(hn, wqkv_ref[l], preferred_element_type=f32) + bqkv_ref[l]
        wo_mat = wo_ref[l]
        attn = jnp.zeros_like(h) + bo_ref[l]
        for hh in range(num_heads):
            c0 = hh * dim_k
            q = qkv[:, c0:c0 + dim_k]
            k = qkv[:, hidden + c0:hidden + c0 + dim_k]
            v = qkv[:, 2 * hidden + c0:2 * hidden + c0 + dim_k]
            logits = jnp.dot(q, k.T, preferred_element_type=f32) * scale + bmat
            logits = jnp.where(mask, logits, neg)
            logits = logits - jnp.max(logits, axis=-1, keepdims=True)
            p = jnp.exp(logits)      # masked entries underflow to 0 (no extra *mask)
            inv = pl.reciprocal(jnp.sum(p, axis=-1, keepdims=True), approx=True)
            head = jnp.dot(p * inv, v, preferred_element_type=f32)
            # cat(heads) @ W_out == sum_h head_h @ W_out[h*dk:(h+1)*dk, :]
            attn = attn + jnp.dot(head, wo_mat[c0:c0 + dim_k, :],
                                  preferred_element_type=f32)
        h = h + attn                                           # residual 1

        # ------------------------ feed-forward -----------------------
        x1 = jnp.dot(_layer_norm(h), wff1_ref[l],
                     preferred_element_type=f32) + bff1_ref[l]
        x1 = jnp.maximum(x1, 0.0)
        x2 = jnp.dot(x1, wff2_ref[l], preferred_element_type=f32) + bff2_ref[l]
        h = h + x2                                             # residual 2

    # ---- readout: gather the virtual-node row of each graph (selection matmul) ----
    out_ref[...] = jnp.dot(sel_ref[...], h, preferred_element_type=f32)


def _full_spec(shape):
    zeros = (0,) * len(shape)
    return pl.BlockSpec(shape, lambda i: zeros)


def graphormer_forward(params, x_pad, keep, cent, bmat, amask, sel,
                       *, num_layers, num_heads, hidden):
    n_graphs = sel.shape[0]
    dim_k = hidden // num_heads
    args = (
        x_pad, keep, cent, bmat, amask, sel,
        params["w0"], params["b0"], params["w1"], params["b1"],
        params["wqkv"], params["bqkv"], params["wo"], params["bo"],
        params["wff1"], params["bff1"], params["wff2"], params["bff2"],
    )
    kernel = functools.partial(_graphormer_kernel, num_layers=num_layers,
                               num_heads=num_heads, dim_k=dim_k, hidden=hidden)
    return pl.pallas_call(
        kernel,
        out_shape=jax.ShapeDtypeStruct((n_graphs, hidden), jnp.float32),
        grid=(1,),
        in_specs=[_full_spec(a.shape) for a in args],
        out_specs=_full_spec((n_graphs, hidden)),
        compiler_params=pltpu.CompilerParams(dimension_semantics=("arbitrary",)),
    )(*args)


# ---------------------------------------------------------------------------
# Pure-JAX reference (same math) for a correctness sanity check
# ---------------------------------------------------------------------------
def _reference_forward(params, x_pad, keep, cent, bmat, amask, sel,
                       num_layers, num_heads, hidden):
    dim_k = hidden // num_heads
    h = jnp.maximum(x_pad @ params["w0"] + params["b0"], 0.0)
    h = h @ params["w1"] + params["b1"]
    h = h * keep + cent
    mask = amask > 0
    for l in range(num_layers):
        hn = _layer_norm(h)
        qkv = hn @ params["wqkv"][l] + params["bqkv"][l]
        attn = jnp.zeros_like(h) + params["bo"][l]
        for hh in range(num_heads):
            c0 = hh * dim_k
            q = qkv[:, c0:c0 + dim_k]
            k = qkv[:, hidden + c0:hidden + c0 + dim_k]
            v = qkv[:, 2 * hidden + c0:2 * hidden + c0 + dim_k]
            logits = q @ k.T / (dim_k ** 0.5) + bmat
            logits = jnp.where(mask, logits, -jnp.inf)
            alpha = jax.nn.softmax(logits, axis=-1)
            attn = attn + (alpha @ v) @ params["wo"][l][c0:c0 + dim_k, :]
        h = h + attn
        x1 = jnp.maximum(_layer_norm(h) @ params["wff1"][l] + params["bff1"][l], 0.0)
        h = h + x1 @ params["wff2"][l] + params["bff2"][l]
    return sel @ h


# ---------------------------------------------------------------------------
# Deterministic synthetic parameters
# ---------------------------------------------------------------------------
def _uniform(key, shape, fan_in):
    lim = 1.0 / np.sqrt(fan_in)
    return jax.random.uniform(key, shape, jnp.float32, -lim, lim)


def init_params(key, num_feats, hidden, num_heads, dim_ff, num_layers,
                max_degree, max_sp_distance):
    ks = iter(jax.random.split(key, 16))
    return dict(
        w0=_uniform(next(ks), (num_feats, hidden), num_feats),
        b0=_uniform(next(ks), (1, hidden), num_feats),
        w1=_uniform(next(ks), (hidden, hidden), hidden),
        b1=_uniform(next(ks), (1, hidden), hidden),
        wqkv=_uniform(next(ks), (num_layers, hidden, 3 * hidden), hidden),
        bqkv=_uniform(next(ks), (num_layers, 1, 3 * hidden), hidden),
        wo=_uniform(next(ks), (num_layers, hidden, hidden), hidden),
        bo=_uniform(next(ks), (num_layers, 1, hidden), hidden),
        wff1=_uniform(next(ks), (num_layers, hidden, dim_ff), hidden),
        bff1=_uniform(next(ks), (num_layers, 1, dim_ff), hidden),
        wff2=_uniform(next(ks), (num_layers, dim_ff, hidden), dim_ff),
        bff2=_uniform(next(ks), (num_layers, 1, hidden), dim_ff),
        centrality=jax.random.normal(next(ks), (max_degree + 1, hidden), jnp.float32),
        distance_biases=jax.random.normal(next(ks), (max_sp_distance + 2,), jnp.float32),
        virtnode_dist_bias=jnp.float32(0.0),
    )


if __name__ == "__main__":
    # ---- model config (small, consistent with the module) ----
    num_layers = 2
    num_node_features = 16
    hidden = 64
    num_heads = 4
    dim_ff = 128
    max_degree = 100
    max_sp_distance = 100

    num_graphs = 2
    nodes_per_graph = 7
    n_orig = num_graphs * nodes_per_graph
    n_tot = n_orig + num_graphs          # + one virtual node per graph

    key = jax.random.PRNGKey(0)
    k_param, k_x = jax.random.split(key)
    params = init_params(k_param, num_node_features, hidden, num_heads, dim_ff,
                         num_layers, max_degree, max_sp_distance)
    x_orig = jax.random.normal(k_x, (n_orig, num_node_features), jnp.float32)

    # ---- deterministic graph: bidirectional ring within each graph ----
    src, dst = [], []
    for g in range(num_graphs):
        base = g * nodes_per_graph
        for i in range(nodes_per_graph):
            j = (i + 1) % nodes_per_graph
            src += [base + i, base + j]
            dst += [base + j, base + i]
    batch_orig = np.repeat(np.arange(num_graphs), nodes_per_graph)

    # ---- shortest-path matrix (BFS per graph; host-side preprocessing) ----
    # TODO(synk): utils.compute_shortest_path_matrix is data-dependent graph
    # preprocessing; done on the host, not in the Pallas kernel.
    INF = 10 ** 9
    sp = np.full((n_orig, n_orig), INF, dtype=np.int64)
    adj_list = [[] for _ in range(n_orig)]
    for s, d in zip(src, dst):
        adj_list[s].append(d)
    for s0 in range(n_orig):
        sp[s0, s0] = 0
        frontier, dist = [s0], 0
        while frontier:
            dist += 1
            nxt = []
            for u in frontier:
                for v in adj_list[u]:
                    if sp[s0, v] > dist:
                        sp[s0, v] = dist
                        nxt.append(v)
            frontier = nxt
    sp = np.minimum(sp, max_sp_distance)

    # ---- VirtualNodeBatch: one virtual node per graph, bidirectional edges ----
    batch_ext = np.concatenate([batch_orig, np.arange(num_graphs)])
    is_virtual = np.zeros(n_tot, dtype=bool)
    is_virtual[n_orig:] = True
    vsrc = list(src)
    for g in range(num_graphs):
        vn = n_orig + g
        for i in range(nodes_per_graph):
            node = g * nodes_per_graph + i
            vsrc += [vn, node]
    degrees = np.minimum(np.bincount(np.array(vsrc), minlength=n_tot), max_degree)

    # ---- attention mask (same graph) ----
    amask = (batch_ext[:, None] == batch_ext[None, :]).astype(np.float32)

    # ---- B matrix (distance biases) ----
    db = np.asarray(params["distance_biases"])
    bmat = np.full((n_tot, n_tot), db[-1], dtype=np.float32)
    bmat[:n_orig, :n_orig] = db[sp]
    vpair = ((is_virtual[:, None] & ~is_virtual[None, :]) |
             (~is_virtual[:, None] & is_virtual[None, :])) & \
            (batch_ext[:, None] == batch_ext[None, :])
    bmat[vpair] = float(params["virtnode_dist_bias"])
    np.fill_diagonal(bmat, db[0])

    # ---- kernel inputs ----
    x_pad = jnp.concatenate(
        [x_orig, jnp.zeros((num_graphs, num_node_features), jnp.float32)], axis=0)
    keep = jnp.asarray((~is_virtual).astype(np.float32)).reshape(n_tot, 1)
    cent = jnp.take(params["centrality"], jnp.asarray(degrees, jnp.int32), axis=0)
    sel_np = np.zeros((num_graphs, n_tot), np.float32)
    for g in range(num_graphs):
        sel_np[g, n_orig + g] = 1.0
    bmat_j, amask_j, sel_j = jnp.asarray(bmat), jnp.asarray(amask), jnp.asarray(sel_np)

    out = graphormer_forward(params, x_pad, keep, cent, bmat_j, amask_j, sel_j,
                             num_layers=num_layers, num_heads=num_heads, hidden=hidden)
    out = jax.block_until_ready(out)

    ref = _reference_forward(params, x_pad, keep, cent, bmat_j, amask_j, sel_j,
                             num_layers, num_heads, hidden)
    ref = jax.block_until_ready(ref)

    assert out.shape == (num_graphs, hidden)
    assert bool(jnp.all(jnp.isfinite(out)))
    assert np.allclose(np.asarray(out), np.asarray(ref), rtol=5e-2, atol=5e-2)
    print("KERNEL_OK")
</pallas_src>

<mosaic_0001>
module attributes {stable_mosaic.version = 11 : i64} {
  func.func @_graphormer_kernel(%arg0: i32, %arg1: memref<16x16xf32, #tpu.memory_space<vmem>>, %arg2: memref<16x1xf32, #tpu.memory_space<vmem>>, %arg3: memref<16x64xf32, #tpu.memory_space<vmem>>, %arg4: memref<16x16xf32, #tpu.memory_space<vmem>>, %arg5: memref<16x16xf32, #tpu.memory_space<vmem>>, %arg6: memref<2x16xf32, #tpu.memory_space<vmem>>, %arg7: memref<16x64xf32, #tpu.memory_space<vmem>>, %arg8: memref<1x64xf32, #tpu.memory_space<vmem>>, %arg9: memref<64x64xf32, #tpu.memory_space<vmem>>, %arg10: memref<1x64xf32, #tpu.memory_space<vmem>>, %arg11: memref<2x64x192xf32, #tpu.memory_space<vmem>>, %arg12: memref<2x1x192xf32, #tpu.memory_space<vmem>>, %arg13: memref<2x64x64xf32, #tpu.memory_space<vmem>>, %arg14: memref<2x1x64xf32, #tpu.memory_space<vmem>>, %arg15: memref<2x64x128xf32, #tpu.memory_space<vmem>>, %arg16: memref<2x1x128xf32, #tpu.memory_space<vmem>>, %arg17: memref<2x128x64xf32, #tpu.memory_space<vmem>>, %arg18: memref<2x1x64xf32, #tpu.memory_space<vmem>>, %arg19: memref<2x64xf32, #tpu.memory_space<vmem>>) attributes {dimension_semantics = [#tpu.dimension_semantics<arbitrary>], iteration_bounds = array<i64: 1>, scalar_prefetch = 0 : i64, scratch_operands = 0 : i64, tpu.core_type = #tpu.core_type<tc>, window_params = [{pipeline_mode = #tpu.pipeline_mode<synchronous>, transform_indices = @transform_0, window_bounds = array<i64: 16, 16>}, {pipeline_mode = #tpu.pipeline_mode<synchronous>, transform_indices = @transform_1, window_bounds = array<i64: 16, 1>}, {pipeline_mode = #tpu.pipeline_mode<synchronous>, transform_indices = @transform_2, window_bounds = array<i64: 16, 64>}, {pipeline_mode = #tpu.pipeline_mode<synchronous>, transform_indices = @transform_3, window_bounds = array<i64: 16, 16>}, {pipeline_mode = #tpu.pipeline_mode<synchronous>, transform_indices = @transform_4, window_bounds = array<i64: 16, 16>}, {pipeline_mode = #tpu.pipeline_mode<synchronous>, transform_indices = @transform_5, window_bounds = array<i64: 2, 16>}, {pipeline_mode = #tpu.pipeline_mode<synchronous>, transform_indices = @transform_6, window_bounds = array<i64: 16, 64>}, {pipeline_mode = #tpu.pipeline_mode<synchronous>, transform_indices = @transform_7, window_bounds = array<i64: 1, 64>}, {pipeline_mode = #tpu.pipeline_mode<synchronous>, transform_indices = @transform_8, window_bounds = array<i64: 64, 64>}, {pipeline_mode = #tpu.pipeline_mode<synchronous>, transform_indices = @transform_9, window_bounds = array<i64: 1, 64>}, {pipeline_mode = #tpu.pipeline_mode<synchronous>, transform_indices = @transform_10, window_bounds = array<i64: 2, 64, 192>}, {pipeline_mode = #tpu.pipeline_mode<synchronous>, transform_indices = @transform_11, window_bounds = array<i64: 2, 1, 192>}, {pipeline_mode = #tpu.pipeline_mode<synchronous>, transform_indices = @transform_12, window_bounds = array<i64: 2, 64, 64>}, {pipeline_mode = #tpu.pipeline_mode<synchronous>, transform_indices = @transform_13, window_bounds = array<i64: 2, 1, 64>}, {pipeline_mode = #tpu.pipeline_mode<synchronous>, transform_indices = @transform_14, window_bounds = array<i64: 2, 64, 128>}, {pipeline_mode = #tpu.pipeline_mode<synchronous>, transform_indices = @transform_15, window_bounds = array<i64: 2, 1, 128>}, {pipeline_mode = #tpu.pipeline_mode<synchronous>, transform_indices = @transform_16, window_bounds = array<i64: 2, 128, 64>}, {pipeline_mode = #tpu.pipeline_mode<synchronous>, transform_indices = @transform_17, window_bounds = array<i64: 2, 1, 64>}, {pipeline_mode = #tpu.pipeline_mode<synchronous>, transform_indices = @transform_18, window_bounds = array<i64: 2, 64>}]} {
    %c0 = arith.constant 0 : index
    %c0_0 = arith.constant 0 : index
    %0 = vector.load %arg1[%c0, %c0_0] : memref<16x16xf32, #tpu.memory_space<vmem>>, vector<16x16xf32>
    %c0_1 = arith.constant 0 : index
    %c0_2 = arith.constant 0 : index
    %1 = vector.load %arg7[%c0_1, %c0_2] : memref<16x64xf32, #tpu.memory_space<vmem>>, vector<16x64xf32>
    %cst = arith.constant dense<0.000000e+00> : vector<16x64xf32>
    %2 = tpu.matmul %0, %1, %cst {dimension_numbers = #tpu.dot_dimension_numbers<[1], [0], [0], [1], [0, 0, 1, 1], [], []>} : vector<16x16xf32>, vector<16x64xf32>, vector<16x64xf32> -> vector<16x64xf32>
    %c0_3 = arith.constant 0 : index
    %c0_4 = arith.constant 0 : index
    %3 = vector.load %arg8[%c0_3, %c0_4] : memref<1x64xf32, #tpu.memory_space<vmem>>, vector<1x64xf32>
    %4 = vector.broadcast %3 : vector<1x64xf32> to vector<16x64xf32>
    %5 = arith.addf %2, %4 : vector<16x64xf32>
    %cst_5 = arith.constant 0.000000e+00 : f32
    %6 = vector.broadcast %cst_5 : f32 to vector<16x64xf32>
    %7 = arith.maximumf %5, %6 : vector<16x64xf32>
    %c0_6 = arith.constant 0 : index
    %c0_7 = arith.constant 0 : index
    %8 = vector.load %arg9[%c0_6, %c0_7] : memref<64x64xf32, #tpu.memory_space<vmem>>, vector<64x64xf32>
    %cst_8 = arith.constant dense<0.000000e+00> : vector<16x64xf32>
    %9 = tpu.matmul %7, %8, %cst_8 {dimension_numbers = #tpu.dot_dimension_numbers<[1], [0], [0], [1], [0, 0, 1, 1], [], []>} : vector<16x64xf32>, vector<64x64xf32>, vector<16x64xf32> -> vector<16x64xf32>
    %c0_9 = arith.constant 0 : index
    %c0_10 = arith.constant 0 : index
    %10 = vector.load %arg10[%c0_9, %c0_10] : memref<1x64xf32, #tpu.memory_space<vmem>>, vector<1x64xf32>
    %11 = vector.broadcast %10 : vector<1x64xf32> to vector<16x64xf32>
    %12 = arith.addf %9, %11 : vector<16x64xf32>
    %c0_11 = arith.constant 0 : index
    %c0_12 = arith.constant 0 : index
    %13 = vector.load %arg2[%c0_11, %c0_12] : memref<16x1xf32, #tpu.memory_space<vmem>>, vector<16x1xf32>
    %14 = vector.broadcast %13 : vector<16x1xf32> to vector<16x64xf32>
    %15 = arith.mulf %12, %14 : vector<16x64xf32>
    %c0_13 = arith.constant 0 : index
    %c0_14 = arith.constant 0 : index
    %16 = vector.load %arg3[%c0_13, %c0_14] : memref<16x64xf32, #tpu.memory_space<vmem>>, vector<16x64xf32>
    %17 = arith.addf %15, %16 : vector<16x64xf32>
    %c0_15 = arith.constant 0 : index
    %c0_16 = arith.constant 0 : index
    %18 = vector.load %arg4[%c0_15, %c0_16] : memref<16x16xf32, #tpu.memory_space<vmem>>, vector<16x16xf32>
    %c0_17 = arith.constant 0 : index
    %c0_18 = arith.constant 0 : index
    %19 = vector.load %arg5[%c0_17, %c0_18] : memref<16x16xf32, #tpu.memory_space<vmem>>, vector<16x16xf32>
    %cst_19 = arith.constant 0.000000e+00 : f32
    %20 = vector.broadcast %cst_19 : f32 to vector<16x16xf32>
    %21 = arith.cmpf ogt, %19, %20 : vector<16x16xf32>
    %cst_20 = arith.constant dense<0.000000e+00> : vector<16xf32>
    %22 = vector.multi_reduction <add>, %17, %cst_20 [1] : vector<16x64xf32> to vector<16xf32>
    %23 = vector.shape_cast %22 : vector<16xf32> to vector<16x1xf32>
    %cst_21 = arith.constant 6.400000e+01 : f32
    %24 = vector.broadcast %cst_21 : f32 to vector<16x1xf32>
    %25 = arith.divf %23, %24 : vector<16x1xf32>
    %26 = vector.broadcast %25 : vector<16x1xf32> to vector<16x64xf32>
    %27 = arith.subf %17, %26 : vector<16x64xf32>
    %28 = arith.mulf %27, %27 : vector<16x64xf32>
    %cst_22 = arith.constant dense<0.000000e+00> : vector<16xf32>
    %29 = vector.multi_reduction <add>, %28, %cst_22 [1] : vector<16x64xf32> to vector<16xf32>
    %30 = vector.shape_cast %29 : vector<16xf32> to vector<16x1xf32>
    %cst_23 = arith.constant 6.400000e+01 : f32
    %31 = vector.broadcast %cst_23 : f32 to vector<16x1xf32>
    %32 = arith.divf %30, %31 : vector<16x1xf32>
    %cst_24 = arith.constant 9.99999974E-6 : f32
    %33 = vector.broadcast %cst_24 : f32 to vector<16x1xf32>
    %34 = arith.addf %32, %33 : vector<16x1xf32>
    %35 = math.rsqrt %34 : vector<16x1xf32>
    %36 = vector.broadcast %35 : vector<16x1xf32> to vector<16x64xf32>
    %37 = arith.mulf %27, %36 : vector<16x64xf32>
    %c0_25 = arith.constant 0 : index
    %c0_26 = arith.constant 0 : index
    %c0_27 = arith.constant 0 : index
    %38 = vector.load %arg11[%c0_25, %c0_26, %c0_27] : memref<2x64x192xf32, #tpu.memory_space<vmem>>, vector<1x64x192xf32>
    %39 = vector.shape_cast %38 : vector<1x64x192xf32> to vector<64x192xf32>
    %cst_28 = arith.constant dense<0.000000e+00> : vector<16x192xf32>
    %40 = tpu.matmul %37, %39, %cst_28 {dimension_numbers = #tpu.dot_dimension_numbers<[1], [0], [0], [1], [0, 0, 1, 1], [], []>} : vector<16x64xf32>, vector<64x192xf32>, vector<16x192xf32> -> vector<16x192xf32>
    %c0_29 = arith.constant 0 : index
    %c0_30 = arith.constant 0 : index
    %c0_31 = arith.constant 0 : index
    %41 = vector.load %arg12[%c0_29, %c0_30, %c0_31] : memref<2x1x192xf32, #tpu.memory_space<vmem>>, vector<1x1x192xf32>
    %42 = vector.shape_cast %41 : vector<1x1x192xf32> to vector<1x192xf32>
    %43 = vector.broadcast %42 : vector<1x192xf32> to vector<16x192xf32>
    %44 = arith.addf %40, %43 : vector<16x192xf32>
    %c0_32 = arith.constant 0 : index
    %c0_33 = arith.constant 0 : index
    %c0_34 = arith.constant 0 : index
    %45 = vector.load %arg13[%c0_32, %c0_33, %c0_34] : memref<2x64x64xf32, #tpu.memory_space<vmem>>, vector<1x64x64xf32>
    %46 = vector.shape_cast %45 : vector<1x64x64xf32> to vector<64x64xf32>
    %cst_35 = arith.constant 0.000000e+00 : f32
    %47 = vector.broadcast %cst_35 : f32 to vector<16x64xf32>
    %c0_36 = arith.constant 0 : index
    %c0_37 = arith.constant 0 : index
    %c0_38 = arith.constant 0 : index
    %48 = vector.load %arg14[%c0_36, %c0_37, %c0_38] : memref<2x1x64xf32, #tpu.memory_space<vmem>>, vector<1x1x64xf32>
    %49 = vector.shape_cast %48 : vector<1x1x64xf32> to vector<1x64xf32>
    %50 = vector.broadcast %49 : vector<1x64xf32> to vector<16x64xf32>
    %51 = arith.addf %47, %50 : vector<16x64xf32>
    %52 = vector.extract_strided_slice %44 {offsets = [0, 0], sizes = [16, 16], strides = [1, 1]} : vector<16x192xf32> to vector<16x16xf32>
    %53 = vector.extract_strided_slice %44 {offsets = [0, 64], sizes = [16, 16], strides = [1, 1]} : vector<16x192xf32> to vector<16x16xf32>
    %54 = vector.extract_strided_slice %44 {offsets = [0, 128], sizes = [16, 16], strides = [1, 1]} : vector<16x192xf32> to vector<16x16xf32>
    %55 = tpu.transpose %53, [1, 0] : vector<16x16xf32> -> vector<16x16xf32>
    %cst_39 = arith.constant dense<0.000000e+00> : vector<16x16xf32>
    %56 = tpu.matmul %52, %55, %cst_39 {dimension_numbers = #tpu.dot_dimension_numbers<[1], [0], [0], [1], [0, 0, 1, 1], [], []>} : vector<16x16xf32>, vector<16x16xf32>, vector<16x16xf32> -> vector<16x16xf32>
    %cst_40 = arith.constant 2.500000e-01 : f32
    %57 = vector.broadcast %cst_40 : f32 to vector<16x16xf32>
    %58 = arith.mulf %56, %57 : vector<16x16xf32>
    %59 = arith.addf %58, %18 : vector<16x16xf32>
    %cst_41 = arith.constant -1.000000e+30 : f32
    %60 = vector.broadcast %cst_41 : f32 to vector<16x16xf32>
    %61 = arith.select %21, %59, %60 : vector<16x16xi1>, vector<16x16xf32>
    %cst_42 = arith.constant dense<0xFF800000> : vector<16xf32>
    %62 = vector.multi_reduction <maximumf>, %61, %cst_42 [1] : vector<16x16xf32> to vector<16xf32>
    %63 = vector.shape_cast %62 : vector<16xf32> to vector<16x1xf32>
    %64 = vector.broadcast %63 : vector<16x1xf32> to vector<16x16xf32>
    %65 = arith.subf %61, %64 : vector<16x16xf32>
    %66 = math.exp %65 : vector<16x16xf32>
    %cst_43 = arith.constant dense<0.000000e+00> : vector<16xf32>
    %67 = vector.multi_reduction <add>, %66, %cst_43 [1] : vector<16x16xf32> to vector<16xf32>
    %68 = vector.shape_cast %67 : vector<16xf32> to vector<16x1xf32>
    %69 = tpu.reciprocal %68 {approx = true} : vector<16x1xf32> -> vector<16x1xf32>
    %70 = vector.broadcast %69 : vector<16x1xf32> to vector<16x16xf32>
    %71 = arith.mulf %66, %70 : vector<16x16xf32>
    %cst_44 = arith.constant dense<0.000000e+00> : vector<16x16xf32>
    %72 = tpu.matmul %71, %54, %cst_44 {dimension_numbers = #tpu.dot_dimension_numbers<[1], [0], [0], [1], [0, 0, 1, 1], [], []>} : vector<16x16xf32>, vector<16x16xf32>, vector<16x16xf32> -> vector<16x16xf32>
    %73 = vector.extract_strided_slice %46 {offsets = [0, 0], sizes = [16, 64], strides = [1, 1]} : vector<64x64xf32> to vector<16x64xf32>
    %cst_45 = arith.constant dense<0.000000e+00> : vector<16x64xf32>
    %74 = tpu.matmul %72, %73, %cst_45 {dimension_numbers = #tpu.dot_dimension_numbers<[1], [0], [0], [1], [0, 0, 1, 1], [], []>} : vector<16x16xf32>, vector<16x64xf32>, vector<16x64xf32> -> vector<16x64xf32>
    %75 = arith.addf %51, %74 : vector<16x64xf32>
    %76 = vector.extract_strided_slice %44 {offsets = [0, 16], sizes = [16, 16], strides = [1, 1]} : vector<16x192xf32> to vector<16x16xf32>
    %77 = vector.extract_strided_slice %44 {offsets = [0, 80], sizes = [16, 16], strides = [1, 1]} : vector<16x192xf32> to vector<16x16xf32>
    %78 = vector.extract_strided_slice %44 {offsets = [0, 144], sizes = [16, 16], strides = [1, 1]} : vector<16x192xf32> to vector<16x16xf32>
    %79 = tpu.transpose %77, [1, 0] : vector<16x16xf32> -> vector<16x16xf32>
    %cst_46 = arith.constant dense<0.000000e+00> : vector<16x16xf32>
    %80 = tpu.matmul %76, %79, %cst_46 {dimension_numbers = #tpu.dot_dimension_numbers<[1], [0], [0], [1], [0, 0, 1, 1], [], []>} : vector<16x16xf32>, vector<16x16xf32>, vector<16x16xf32> -> vector<16x16xf32>
    %cst_47 = arith.constant 2.500000e-01 : f32
    %81 = vector.broadcast %cst_47 : f32 to vector<16x16xf32>
    %82 = arith.mulf %80, %81 : vector<16x16xf32>
    %83 = arith.addf %82, %18 : vector<16x16xf32>
    %cst_48 = arith.constant -1.000000e+30 : f32
    %84 = vector.broadcast %cst_48 : f32 to vector<16x16xf32>
    %85 = arith.select %21, %83, %84 : vector<16x16xi1>, vector<16x16xf32>
    %cst_49 = arith.constant dense<0xFF800000> : vector<16xf32>
    %86 = vector.multi_reduction <maximumf>, %85, %cst_49 [1] : vector<16x16xf32> to vector<16xf32>
    %87 = vector.shape_cast %86 : vector<16xf32> to vector<16x1xf32>
    %88 = vector.broadcast %87 : vector<16x1xf32> to vector<16x16xf32>
    %89 = arith.subf %85, %88 : vector<16x16xf32>
    %90 = math.exp %89 : vector<16x16xf32>
    %cst_50 = arith.constant dense<0.000000e+00> : vector<16xf32>
    %91 = vector.multi_reduction <add>, %90, %cst_50 [1] : vector<16x16xf32> to vector<16xf32>
    %92 = vector.shape_cast %91 : vector<16xf32> to vector<16x1xf32>
    %93 = tpu.reciprocal %92 {approx = true} : vector<16x1xf32> -> vector<16x1xf32>
    %94 = vector.broadcast %93 : vector<16x1xf32> to vector<16x16xf32>
    %95 = arith.mulf %90, %94 : vector<16x16xf32>
    %cst_51 = arith.constant dense<0.000000e+00> : vector<16x16xf32>
    %96 = tpu.matmul %95, %78, %cst_51 {dimension_numbers = #tpu.dot_dimension_numbers<[1], [0], [0], [1], [0, 0, 1, 1], [], []>} : vector<16x16xf32>, vector<16x16xf32>, vector<16x16xf32> -> vector<16x16xf32>
    %97 = vector.extract_strided_slice %46 {offsets = [16, 0], sizes = [16, 64], strides = [1, 1]} : vector<64x64xf32> to vector<16x64xf32>
    %cst_52 = arith.constant dense<0.000000e+00> : vector<16x64xf32>
    %98 = tpu.matmul %96, %97, %cst_52 {dimension_numbers = #tpu.dot_dimension_numbers<[1], [0], [0], [1], [0, 0, 1, 1], [], []>} : vector<16x16xf32>, vector<16x64xf32>, vector<16x64xf32> -> vector<16x64xf32>
    %99 = arith.addf %75, %98 : vector<16x64xf32>
    %100 = vector.extract_strided_slice %44 {offsets = [0, 32], sizes = [16, 16], strides = [1, 1]} : vector<16x192xf32> to vector<16x16xf32>
    %101 = vector.extract_strided_slice %44 {offsets = [0, 96], sizes = [16, 16], strides = [1, 1]} : vector<16x192xf32> to vector<16x16xf32>
    %102 = vector.extract_strided_slice %44 {offsets = [0, 160], sizes = [16, 16], strides = [1, 1]} : vector<16x192xf32> to vector<16x16xf32>
    %103 = tpu.transpose %101, [1, 0] : vector<16x16xf32> -> vector<16x16xf32>
    %cst_53 = arith.constant dense<0.000000e+00> : vector<16x16xf32>
    %104 = tpu.matmul %100, %103, %cst_53 {dimension_numbers = #tpu.dot_dimension_numbers<[1], [0], [0], [1], [0, 0, 1, 1], [], []>} : vector<16x16xf32>, vector<16x16xf32>, vector<16x16xf32> -> vector<16x16xf32>
    %cst_54 = arith.constant 2.500000e-01 : f32
    %105 = vector.broadcast %cst_54 : f32 to vector<16x16xf32>
    %106 = arith.mulf %104, %105 : vector<16x16xf32>
    %107 = arith.addf %106, %18 : vector<16x16xf32>
    %cst_55 = arith.constant -1.000000e+30 : f32
    %108 = vector.broadcast %cst_55 : f32 to vector<16x16xf32>
    %109 = arith.select %21, %107, %108 : vector<16x16xi1>, vector<16x16xf32>
    %cst_56 = arith.constant dense<0xFF800000> : vector<16xf32>
    %110 = vector.multi_reduction <maximumf>, %109, %cst_56 [1] : vector<16x16xf32> to vector<16xf32>
    %111 = vector.shape_cast %110 : vector<16xf32> to vector<16x1xf32>
    %112 = vector.broadcast %111 : vector<16x1xf32> to vector<16x16xf32>
    %113 = arith.subf %109, %112 : vector<16x16xf32>
    %114 = math.exp %113 : vector<16x16xf32>
    %cst_57 = arith.constant dense<0.000000e+00> : vector<16xf32>
    %115 = vector.multi_reduction <add>, %114, %cst_57 [1] : vector<16x16xf32> to vector<16xf32>
    %116 = vector.shape_cast %115 : vector<16xf32> to vector<16x1xf32>
    %117 = tpu.reciprocal %116 {approx = true} : vector<16x1xf32> -> vector<16x1xf32>
    %118 = vector.broadcast %117 : vector<16x1xf32> to vector<16x16xf32>
    %119 = arith.mulf %114, %118 : vector<16x16xf32>
    %cst_58 = arith.constant dense<0.000000e+00> : vector<16x16xf32>
    %120 = tpu.matmul %119, %102, %cst_58 {dimension_numbers = #tpu.dot_dimension_numbers<[1], [0], [0], [1], [0, 0, 1, 1], [], []>} : vector<16x16xf32>, vector<16x16xf32>, vector<16x16xf32> -> vector<16x16xf32>
    %121 = vector.extract_strided_slice %46 {offsets = [32, 0], sizes = [16, 64], strides = [1, 1]} : vector<64x64xf32> to vector<16x64xf32>
    %cst_59 = arith.constant dense<0.000000e+00> : vector<16x64xf32>
    %122 = tpu.matmul %120, %121, %cst_59 {dimension_numbers = #tpu.dot_dimension_numbers<[1], [0], [0], [1], [0, 0, 1, 1], [], []>} : vector<16x16xf32>, vector<16x64xf32>, vector<16x64xf32> -> vector<16x64xf32>
    %123 = arith.addf %99, %122 : vector<16x64xf32>
    %124 = vector.extract_strided_slice %44 {offsets = [0, 48], sizes = [16, 16], strides = [1, 1]} : vector<16x192xf32> to vector<16x16xf32>
    %125 = vector.extract_strided_slice %44 {offsets = [0, 112], sizes = [16, 16], strides = [1, 1]} : vector<16x192xf32> to vector<16x16xf32>
    %126 = vector.extract_strided_slice %44 {offsets = [0, 176], sizes = [16, 16], strides = [1, 1]} : vector<16x192xf32> to vector<16x16xf32>
    %127 = tpu.transpose %125, [1, 0] : vector<16x16xf32> -> vector<16x16xf32>
    %cst_60 = arith.constant dense<0.000000e+00> : vector<16x16xf32>
    %128 = tpu.matmul %124, %127, %cst_60 {dimension_numbers = #tpu.dot_dimension_numbers<[1], [0], [0], [1], [0, 0, 1, 1], [], []>} : vector<16x16xf32>, vector<16x16xf32>, vector<16x16xf32> -> vector<16x16xf32>
    %cst_61 = arith.constant 2.500000e-01 : f32
    %129 = vector.broadcast %cst_61 : f32 to vector<16x16xf32>
    %130 = arith.mulf %128, %129 : vector<16x16xf32>
    %131 = arith.addf %130, %18 : vector<16x16xf32>
    %cst_62 = arith.constant -1.000000e+30 : f32
    %132 = vector.broadcast %cst_62 : f32 to vector<16x16xf32>
    %133 = arith.select %21, %131, %132 : vector<16x16xi1>, vector<16x16xf32>
    %cst_63 = arith.constant dense<0xFF800000> : vector<16xf32>
    %134 = vector.multi_reduction <maximumf>, %133, %cst_63 [1] : vector<16x16xf32> to vector<16xf32>
    %135 = vector.shape_cast %134 : vector<16xf32> to vector<16x1xf32>
    %136 = vector.broadcast %135 : vector<16x1xf32> to vector<16x16xf32>
    %137 = arith.subf %133, %136 : vector<16x16xf32>
    %138 = math.exp %137 : vector<16x16xf32>
    %cst_64 = arith.constant dense<0.000000e+00> : vector<16xf32>
    %139 = vector.multi_reduction <add>, %138, %cst_64 [1] : vector<16x16xf32> to vector<16xf32>
    %140 = vector.shape_cast %139 : vector<16xf32> to vector<16x1xf32>
    %141 = tpu.reciprocal %140 {approx = true} : vector<16x1xf32> -> vector<16x1xf32>
    %142 = vector.broadcast %141 : vector<16x1xf32> to vector<16x16xf32>
    %143 = arith.mulf %138, %142 : vector<16x16xf32>
    %cst_65 = arith.constant dense<0.000000e+00> : vector<16x16xf32>
    %144 = tpu.matmul %143, %126, %cst_65 {dimension_numbers = #tpu.dot_dimension_numbers<[1], [0], [0], [1], [0, 0, 1, 1], [], []>} : vector<16x16xf32>, vector<16x16xf32>, vector<16x16xf32> -> vector<16x16xf32>
    %145 = vector.extract_strided_slice %46 {offsets = [48, 0], sizes = [16, 64], strides = [1, 1]} : vector<64x64xf32> to vector<16x64xf32>
    %cst_66 = arith.constant dense<0.000000e+00> : vector<16x64xf32>
    %146 = tpu.matmul %144, %145, %cst_66 {dimension_numbers = #tpu.dot_dimension_numbers<[1], [0], [0], [1], [0, 0, 1, 1], [], []>} : vector<16x16xf32>, vector<16x64xf32>, vector<16x64xf32> -> vector<16x64xf32>
    %147 = arith.addf %123, %146 : vector<16x64xf32>
    %148 = arith.addf %17, %147 : vector<16x64xf32>
    %cst_67 = arith.constant dense<0.000000e+00> : vector<16xf32>
    %149 = vector.multi_reduction <add>, %148, %cst_67 [1] : vector<16x64xf32> to vector<16xf32>
    %150 = vector.shape_cast %149 : vector<16xf32> to vector<16x1xf32>
    %cst_68 = arith.constant 6.400000e+01 : f32
    %151 = vector.broadcast %cst_68 : f32 to vector<16x1xf32>
    %152 = arith.divf %150, %151 : vector<16x1xf32>
    %153 = vector.broadcast %152 : vector<16x1xf32> to vector<16x64xf32>
    %154 = arith.subf %148, %153 : vector<16x64xf32>
    %155 = arith.mulf %154, %154 : vector<16x64xf32>
    %cst_69 = arith.constant dense<0.000000e+00> : vector<16xf32>
    %156 = vector.multi_reduction <add>, %155, %cst_69 [1] : vector<16x64xf32> to vector<16xf32>
    %157 = vector.shape_cast %156 : vector<16xf32> to vector<16x1xf32>
    %cst_70 = arith.constant 6.400000e+01 : f32
    %158 = vector.broadcast %cst_70 : f32 to vector<16x1xf32>
    %159 = arith.divf %157, %158 : vector<16x1xf32>
    %cst_71 = arith.constant 9.99999974E-6 : f32
    %160 = vector.broadcast %cst_71 : f32 to vector<16x1xf32>
    %161 = arith.addf %159, %160 : vector<16x1xf32>
    %162 = math.rsqrt %161 : vector<16x1xf32>
    %163 = vector.broadcast %162 : vector<16x1xf32> to vector<16x64xf32>
    %164 = arith.mulf %154, %163 : vector<16x64xf32>
    %c0_72 = arith.constant 0 : index
    %c0_73 = arith.constant 0 : index
    %c0_74 = arith.constant 0 : index
    %165 = vector.load %arg15[%c0_72, %c0_73, %c0_74] : memref<2x64x128xf32, #tpu.memory_space<vmem>>, vector<1x64x128xf32>
    %166 = vector.shape_cast %165 : vector<1x64x128xf32> to vector<64x128xf32>
    %cst_75 = arith.constant dense<0.000000e+00> : vector<16x128xf32>
    %167 = tpu.matmul %164, %166, %cst_75 {dimension_numbers = #tpu.dot_dimension_numbers<[1], [0], [0], [1], [0, 0, 1, 1], [], []>} : vector<16x64xf32>, vector<64x128xf32>, vector<16x128xf32> -> vector<16x128xf32>
    %c0_76 = arith.constant 0 : index
    %c0_77 = arith.constant 0 : index
    %c0_78 = arith.constant 0 : index
    %168 = vector.load %arg16[%c0_76, %c0_77, %c0_78] : memref<2x1x128xf32, #tpu.memory_space<vmem>>, vector<1x1x128xf32>
    %169 = vector.shape_cast %168 : vector<1x1x128xf32> to vector<1x128xf32>
    %170 = vector.broadcast %169 : vector<1x128xf32> to vector<16x128xf32>
    %171 = arith.addf %167, %170 : vector<16x128xf32>
    %cst_79 = arith.constant 0.000000e+00 : f32
    %172 = vector.broadcast %cst_79 : f32 to vector<16x128xf32>
    %173 = arith.maximumf %171, %172 : vector<16x128xf32>
    %c0_80 = arith.constant 0 : index
    %c0_81 = arith.constant 0 : index
    %c0_82 = arith.constant 0 : index
    %174 = vector.load %arg17[%c0_80, %c0_81, %c0_82] : memref<2x128x64xf32, #tpu.memory_space<vmem>>, vector<1x128x64xf32>
    %175 = vector.shape_cast %174 : vector<1x128x64xf32> to vector<128x64xf32>
    %cst_83 = arith.constant dense<0.000000e+00> : vector<16x64xf32>
    %176 = tpu.matmul %173, %175, %cst_83 {dimension_numbers = #tpu.dot_dimension_numbers<[1], [0], [0], [1], [0, 0, 1, 1], [], []>} : vector<16x128xf32>, vector<128x64xf32>, vector<16x64xf32> -> vector<16x64xf32>
    %c0_84 = arith.constant 0 : index
    %c0_85 = arith.constant 0 : index
    %c0_86 = arith.constant 0 : index
    %177 = vector.load %arg18[%c0_84, %c0_85, %c0_86] : memref<2x1x64xf32, #tpu.memory_space<vmem>>, vector<1x1x64xf32>
    %178 = vector.shape_cast %177 : vector<1x1x64xf32> to vector<1x64xf32>
    %179 = vector.broadcast %178 : vector<1x64xf32> to vector<16x64xf32>
    %180 = arith.addf %176, %179 : vector<16x64xf32>
    %181 = arith.addf %148, %180 : vector<16x64xf32>
    %cst_87 = arith.constant dense<0.000000e+00> : vector<16xf32>
    %182 = vector.multi_reduction <add>, %181, %cst_87 [1] : vector<16x64xf32> to vector<16xf32>
    %183 = vector.shape_cast %182 : vector<16xf32> to vector<16x1xf32>
    %cst_88 = arith.constant 6.400000e+01 : f32
    %184 = vector.broadcast %cst_88 : f32 to vector<16x1xf32>
    %185 = arith.divf %183, %184 : vector<16x1xf32>
    %186 = vector.broadcast %185 : vector<16x1xf32> to vector<16x64xf32>
    %187 = arith.subf %181, %186 : vector<16x64xf32>
    %188 = arith.mulf %187, %187 : vector<16x64xf32>
    %cst_89 = arith.constant dense<0.000000e+00> : vector<16xf32>
    %189 = vector.multi_reduction <add>, %188, %cst_89 [1] : vector<16x64xf32> to vector<16xf32>
    %190 = vector.shape_cast %189 : vector<16xf32> to vector<16x1xf32>
    %cst_90 = arith.constant 6.400000e+01 : f32
    %191 = vector.broadcast %cst_90 : f32 to vector<16x1xf32>
    %192 = arith.divf %190, %191 : vector<16x1xf32>
    %cst_91 = arith.constant 9.99999974E-6 : f32
    %193 = vector.broadcast %cst_91 : f32 to vector<16x1xf32>
    %194 = arith.addf %192, %193 : vector<16x1xf32>
    %195 = math.rsqrt %194 : vector<16x1xf32>
    %196 = vector.broadcast %195 : vector<16x1xf32> to vector<16x64xf32>
    %197 = arith.mulf %187, %196 : vector<16x64xf32>
    %c1 = arith.constant 1 : index
    %c0_92 = arith.constant 0 : index
    %c0_93 = arith.constant 0 : index
    %198 = vector.load %arg11[%c1, %c0_92, %c0_93] : memref<2x64x192xf32, #tpu.memory_space<vmem>>, vector<1x64x192xf32>
    %199 = vector.shape_cast %198 : vector<1x64x192xf32> to vector<64x192xf32>
    %cst_94 = arith.constant dense<0.000000e+00> : vector<16x192xf32>
    %200 = tpu.matmul %197, %199, %cst_94 {dimension_numbers = #tpu.dot_dimension_numbers<[1], [0], [0], [1], [0, 0, 1, 1], [], []>} : vector<16x64xf32>, vector<64x192xf32>, vector<16x192xf32> -> vector<16x192xf32>
    %c1_95 = arith.constant 1 : index
    %c0_96 = arith.constant 0 : index
    %c0_97 = arith.constant 0 : index
    %201 = vector.load %arg12[%c1_95, %c0_96, %c0_97] : memref<2x1x192xf32, #tpu.memory_space<vmem>>, vector<1x1x192xf32>
    %202 = vector.shape_cast %201 : vector<1x1x192xf32> to vector<1x192xf32>
    %203 = vector.broadcast %202 : vector<1x192xf32> to vector<16x192xf32>
    %204 = arith.addf %200, %203 : vector<16x192xf32>
    %c1_98 = arith.constant 1 : index
    %c0_99 = arith.constant 0 : index
    %c0_100 = arith.constant 0 : index
    %205 = vector.load %arg13[%c1_98, %c0_99, %c0_100] : memref<2x64x64xf32, #tpu.memory_space<vmem>>, vector<1x64x64xf32>
    %206 = vector.shape_cast %205 : vector<1x64x64xf32> to vector<64x64xf32>
    %cst_101 = arith.constant 0.000000e+00 : f32
    %207 = vector.broadcast %cst_101 : f32 to vector<16x64xf32>
    %c1_102 = arith.constant 1 : index
    %c0_103 = arith.constant 0 : index
    %c0_104 = arith.constant 0 : index
    %208 = vector.load %arg14[%c1_102, %c0_103, %c0_104] : memref<2x1x64xf32, #tpu.memory_space<vmem>>, vector<1x1x64xf32>
    %209 = vector.shape_cast %208 : vector<1x1x64xf32> to vector<1x64xf32>
    %210 = vector.broadcast %209 : vector<1x64xf32> to vector<16x64xf32>
    %211 = arith.addf %207, %210 : vector<16x64xf32>
    %212 = vector.extract_strided_slice %204 {offsets = [0, 0], sizes = [16, 16], strides = [1, 1]} : vector<16x192xf32> to vector<16x16xf32>
    %213 = vector.extract_strided_slice %204 {offsets = [0, 64], sizes = [16, 16], strides = [1, 1]} : vector<16x192xf32> to vector<16x16xf32>
    %214 = vector.extract_strided_slice %204 {offsets = [0, 128], sizes = [16, 16], strides = [1, 1]} : vector<16x192xf32> to vector<16x16xf32>
    %215 = tpu.transpose %213, [1, 0] : vector<16x16xf32> -> vector<16x16xf32>
    %cst_105 = arith.constant dense<0.000000e+00> : vector<16x16xf32>
    %216 = tpu.matmul %212, %215, %cst_105 {dimension_numbers = #tpu.dot_dimension_numbers<[1], [0], [0], [1], [0, 0, 1, 1], [], []>} : vector<16x16xf32>, vector<16x16xf32>, vector<16x16xf32> -> vector<16x16xf32>
    %cst_106 = arith.constant 2.500000e-01 : f32
    %217 = vector.broadcast %cst_106 : f32 to vector<16x16xf32>
    %218 = arith.mulf %216, %217 : vector<16x16xf32>
    %219 = arith.addf %218, %18 : vector<16x16xf32>
    %cst_107 = arith.constant -1.000000e+30 : f32
    %220 = vector.broadcast %cst_107 : f32 to vector<16x16xf32>
    %221 = arith.select %21, %219, %220 : vector<16x16xi1>, vector<16x16xf32>
    %cst_108 = arith.constant dense<0xFF800000> : vector<16xf32>
    %222 = vector.multi_reduction <maximumf>, %221, %cst_108 [1] : vector<16x16xf32> to vector<16xf32>
    %223 = vector.shape_cast %222 : vector<16xf32> to vector<16x1xf32>
    %224 = vector.broadcast %223 : vector<16x1xf32> to vector<16x16xf32>
    %225 = arith.subf %221, %224 : vector<16x16xf32>
    %226 = math.exp %225 : vector<16x16xf32>
    %cst_109 = arith.constant dense<0.000000e+00> : vector<16xf32>
    %227 = vector.multi_reduction <add>, %226, %cst_109 [1] : vector<16x16xf32> to vector<16xf32>
    %228 = vector.shape_cast %227 : vector<16xf32> to vector<16x1xf32>
    %229 = tpu.reciprocal %228 {approx = true} : vector<16x1xf32> -> vector<16x1xf32>
    %230 = vector.broadcast %229 : vector<16x1xf32> to vector<16x16xf32>
    %231 = arith.mulf %226, %230 : vector<16x16xf32>
    %cst_110 = arith.constant dense<0.000000e+00> : vector<16x16xf32>
    %232 = tpu.matmul %231, %214, %cst_110 {dimension_numbers = #tpu.dot_dimension_numbers<[1], [0], [0], [1], [0, 0, 1, 1], [], []>} : vector<16x16xf32>, vector<16x16xf32>, vector<16x16xf32> -> vector<16x16xf32>
    %233 = vector.extract_strided_slice %206 {offsets = [0, 0], sizes = [16, 64], strides = [1, 1]} : vector<64x64xf32> to vector<16x64xf32>
    %cst_111 = arith.constant dense<0.000000e+00> : vector<16x64xf32>
    %234 = tpu.matmul %232, %233, %cst_111 {dimension_numbers = #tpu.dot_dimension_numbers<[1], [0], [0], [1], [0, 0, 1, 1], [], []>} : vector<16x16xf32>, vector<16x64xf32>, vector<16x64xf32> -> vector<16x64xf32>
    %235 = arith.addf %211, %234 : vector<16x64xf32>
    %236 = vector.extract_strided_slice %204 {offsets = [0, 16], sizes = [16, 16], strides = [1, 1]} : vector<16x192xf32> to vector<16x16xf32>
    %237 = vector.extract_strided_slice %204 {offsets = [0, 80], sizes = [16, 16], strides = [1, 1]} : vector<16x192xf32> to vector<16x16xf32>
    %238 = vector.extract_strided_slice %204 {offsets = [0, 144], sizes = [16, 16], strides = [1, 1]} : vector<16x192xf32> to vector<16x16xf32>
    %239 = tpu.transpose %237, [1, 0] : vector<16x16xf32> -> vector<16x16xf32>
    %cst_112 = arith.constant dense<0.000000e+00> : vector<16x16xf32>
    %240 = tpu.matmul %236, %239, %cst_112 {dimension_numbers = #tpu.dot_dimension_numbers<[1], [0], [0], [1], [0, 0, 1, 1], [], []>} : vector<16x16xf32>, vector<16x16xf32>, vector<16x16xf32> -> vector<16x16xf32>
    %cst_113 = arith.constant 2.500000e-01 : f32
    %241 = vector.broadcast %cst_113 : f32 to vector<16x16xf32>
    %242 = arith.mulf %240, %241 : vector<16x16xf32>
    %243 = arith.addf %242, %18 : vector<16x16xf32>
    %cst_114 = arith.constant -1.000000e+30 : f32
    %244 = vector.broadcast %cst_114 : f32 to vector<16x16xf32>
    %245 = arith.select %21, %243, %244 : vector<16x16xi1>, vector<16x16xf32>
    %cst_115 = arith.constant dense<0xFF800000> : vector<16xf32>
    %246 = vector.multi_reduction <maximumf>, %245, %cst_115 [1] : vector<16x16xf32> to vector<16xf32>
    %247 = vector.shape_cast %246 : vector<16xf32> to vector<16x1xf32>
    %248 = vector.broadcast %247 : vector<16x1xf32> to vector<16x16xf32>
    %249 = arith.subf %245, %248 : vector<16x16xf32>
    %250 = math.exp %249 : vector<16x16xf32>
    %cst_116 = arith.constant dense<0.000000e+00> : vector<16xf32>
    %251 = vector.multi_reduction <add>, %250, %cst_116 [1] : vector<16x16xf32> to vector<16xf32>
    %252 = vector.shape_cast %251 : vector<16xf32> to vector<16x1xf32>
    %253 = tpu.reciprocal %252 {approx = true} : vector<16x1xf32> -> vector<16x1xf32>
    %254 = vector.broadcast %253 : vector<16x1xf32> to vector<16x16xf32>
    %255 = arith.mulf %250, %254 : vector<16x16xf32>
    %cst_117 = arith.constant dense<0.000000e+00> : vector<16x16xf32>
    %256 = tpu.matmul %255, %238, %cst_117 {dimension_numbers = #tpu.dot_dimension_numbers<[1], [0], [0], [1], [0, 0, 1, 1], [], []>} : vector<16x16xf32>, vector<16x16xf32>, vector<16x16xf32> -> vector<16x16xf32>
    %257 = vector.extract_strided_slice %206 {offsets = [16, 0], sizes = [16, 64], strides = [1, 1]} : vector<64x64xf32> to vector<16x64xf32>
    %cst_118 = arith.constant dense<0.000000e+00> : vector<16x64xf32>
    %258 = tpu.matmul %256, %257, %cst_118 {dimension_numbers = #tpu.dot_dimension_numbers<[1], [0], [0], [1], [0, 0, 1, 1], [], []>} : vector<16x16xf32>, vector<16x64xf32>, vector<16x64xf32> -> vector<16x64xf32>
    %259 = arith.addf %235, %258 : vector<16x64xf32>
    %260 = vector.extract_strided_slice %204 {offsets = [0, 32], sizes = [16, 16], strides = [1, 1]} : vector<16x192xf32> to vector<16x16xf32>
    %261 = vector.extract_strided_slice %204 {offsets = [0, 96], sizes = [16, 16], strides = [1, 1]} : vector<16x192xf32> to vector<16x16xf32>
    %262 = vector.extract_strided_slice %204 {offsets = [0, 160], sizes = [16, 16], strides = [1, 1]} : vector<16x192xf32> to vector<16x16xf32>
    %263 = tpu.transpose %261, [1, 0] : vector<16x16xf32> -> vector<16x16xf32>
    %cst_119 = arith.constant dense<0.000000e+00> : vector<16x16xf32>
    %264 = tpu.matmul %260, %263, %cst_119 {dimension_numbers = #tpu.dot_dimension_numbers<[1], [0], [0], [1], [0, 0, 1, 1], [], []>} : vector<16x16xf32>, vector<16x16xf32>, vector<16x16xf32> -> vector<16x16xf32>
    %cst_120 = arith.constant 2.500000e-01 : f32
    %265 = vector.broadcast %cst_120 : f32 to vector<16x16xf32>
    %266 = arith.mulf %264, %265 : vector<16x16xf32>
    %267 = arith.addf %266, %18 : vector<16x16xf32>
    %cst_121 = arith.constant -1.000000e+30 : f32
    %268 = vector.broadcast %cst_121 : f32 to vector<16x16xf32>
    %269 = arith.select %21, %267, %268 : vector<16x16xi1>, vector<16x16xf32>
    %cst_122 = arith.constant dense<0xFF800000> : vector<16xf32>
    %270 = vector.multi_reduction <maximumf>, %269, %cst_122 [1] : vector<16x16xf32> to vector<16xf32>
    %271 = vector.shape_cast %270 : vector<16xf32> to vector<16x1xf32>
    %272 = vector.broadcast %271 : vector<16x1xf32> to vector<16x16xf32>
    %273 = arith.subf %269, %272 : vector<16x16xf32>
    %274 = math.exp %273 : vector<16x16xf32>
    %cst_123 = arith.constant dense<0.000000e+00> : vector<16xf32>
    %275 = vector.multi_reduction <add>, %274, %cst_123 [1] : vector<16x16xf32> to vector<16xf32>
    %276 = vector.shape_cast %275 : vector<16xf32> to vector<16x1xf32>
    %277 = tpu.reciprocal %276 {approx = true} : vector<16x1xf32> -> vector<16x1xf32>
    %278 = vector.broadcast %277 : vector<16x1xf32> to vector<16x16xf32>
    %279 = arith.mulf %274, %278 : vector<16x16xf32>
    %cst_124 = arith.constant dense<0.000000e+00> : vector<16x16xf32>
    %280 = tpu.matmul %279, %262, %cst_124 {dimension_numbers = #tpu.dot_dimension_numbers<[1], [0], [0], [1], [0, 0, 1, 1], [], []>} : vector<16x16xf32>, vector<16x16xf32>, vector<16x16xf32> -> vector<16x16xf32>
    %281 = vector.extract_strided_slice %206 {offsets = [32, 0], sizes = [16, 64], strides = [1, 1]} : vector<64x64xf32> to vector<16x64xf32>
    %cst_125 = arith.constant dense<0.000000e+00> : vector<16x64xf32>
    %282 = tpu.matmul %280, %281, %cst_125 {dimension_numbers = #tpu.dot_dimension_numbers<[1], [0], [0], [1], [0, 0, 1, 1], [], []>} : vector<16x16xf32>, vector<16x64xf32>, vector<16x64xf32> -> vector<16x64xf32>
    %283 = arith.addf %259, %282 : vector<16x64xf32>
    %284 = vector.extract_strided_slice %204 {offsets = [0, 48], sizes = [16, 16], strides = [1, 1]} : vector<16x192xf32> to vector<16x16xf32>
    %285 = vector.extract_strided_slice %204 {offsets = [0, 112], sizes = [16, 16], strides = [1, 1]} : vector<16x192xf32> to vector<16x16xf32>
    %286 = vector.extract_strided_slice %204 {offsets = [0, 176], sizes = [16, 16], strides = [1, 1]} : vector<16x192xf32> to vector<16x16xf32>
    %287 = tpu.transpose %285, [1, 0] : vector<16x16xf32> -> vector<16x16xf32>
    %cst_126 = arith.constant dense<0.000000e+00> : vector<16x16xf32>
    %288 = tpu.matmul %284, %287, %cst_126 {dimension_numbers = #tpu.dot_dimension_numbers<[1], [0], [0], [1], [0, 0, 1, 1], [], []>} : vector<16x16xf32>, vector<16x16xf32>, vector<16x16xf32> -> vector<16x16xf32>
    %cst_127 = arith.constant 2.500000e-01 : f32
    %289 = vector.broadcast %cst_127 : f32 to vector<16x16xf32>
    %290 = arith.mulf %288, %289 : vector<16x16xf32>
    %291 = arith.addf %290, %18 : vector<16x16xf32>
    %cst_128 = arith.constant -1.000000e+30 : f32
    %292 = vector.broadcast %cst_128 : f32 to vector<16x16xf32>
    %293 = arith.select %21, %291, %292 : vector<16x16xi1>, vector<16x16xf32>
    %cst_129 = arith.constant dense<0xFF800000> : vector<16xf32>
    %294 = vector.multi_reduction <maximumf>, %293, %cst_129 [1] : vector<16x16xf32> to vector<16xf32>
    %295 = vector.shape_cast %294 : vector<16xf32> to vector<16x1xf32>
    %296 = vector.broadcast %295 : vector<16x1xf32> to vector<16x16xf32>
    %297 = arith.subf %293, %296 : vector<16x16xf32>
    %298 = math.exp %297 : vector<16x16xf32>
    %cst_130 = arith.constant dense<0.000000e+00> : vector<16xf32>
    %299 = vector.multi_reduction <add>, %298, %cst_130 [1] : vector<16x16xf32> to vector<16xf32>
    %300 = vector.shape_cast %299 : vector<16xf32> to vector<16x1xf32>
    %301 = tpu.reciprocal %300 {approx = true} : vector<16x1xf32> -> vector<16x1xf32>
    %302 = vector.broadcast %301 : vector<16x1xf32> to vector<16x16xf32>
    %303 = arith.mulf %298, %302 : vector<16x16xf32>
    %cst_131 = arith.constant dense<0.000000e+00> : vector<16x16xf32>
    %304 = tpu.matmul %303, %286, %cst_131 {dimension_numbers = #tpu.dot_dimension_numbers<[1], [0], [0], [1], [0, 0, 1, 1], [], []>} : vector<16x16xf32>, vector<16x16xf32>, vector<16x16xf32> -> vector<16x16xf32>
    %305 = vector.extract_strided_slice %206 {offsets = [48, 0], sizes = [16, 64], strides = [1, 1]} : vector<64x64xf32> to vector<16x64xf32>
    %cst_132 = arith.constant dense<0.000000e+00> : vector<16x64xf32>
    %306 = tpu.matmul %304, %305, %cst_132 {dimension_numbers = #tpu.dot_dimension_numbers<[1], [0], [0], [1], [0, 0, 1, 1], [], []>} : vector<16x16xf32>, vector<16x64xf32>, vector<16x64xf32> -> vector<16x64xf32>
    %307 = arith.addf %283, %306 : vector<16x64xf32>
    %308 = arith.addf %181, %307 : vector<16x64xf32>
    %cst_133 = arith.constant dense<0.000000e+00> : vector<16xf32>
    %309 = vector.multi_reduction <add>, %308, %cst_133 [1] : vector<16x64xf32> to vector<16xf32>
    %310 = vector.shape_cast %309 : vector<16xf32> to vector<16x1xf32>
    %cst_134 = arith.constant 6.400000e+01 : f32
    %311 = vector.broadcast %cst_134 : f32 to vector<16x1xf32>
    %312 = arith.divf %310, %311 : vector<16x1xf32>
    %313 = vector.broadcast %312 : vector<16x1xf32> to vector<16x64xf32>
    %314 = arith.subf %308, %313 : vector<16x64xf32>
    %315 = arith.mulf %314, %314 : vector<16x64xf32>
    %cst_135 = arith.constant dense<0.000000e+00> : vector<16xf32>
    %316 = vector.multi_reduction <add>, %315, %cst_135 [1] : vector<16x64xf32> to vector<16xf32>
    %317 = vector.shape_cast %316 : vector<16xf32> to vector<16x1xf32>
    %cst_136 = arith.constant 6.400000e+01 : f32
    %318 = vector.broadcast %cst_136 : f32 to vector<16x1xf32>
    %319 = arith.divf %317, %318 : vector<16x1xf32>
    %cst_137 = arith.constant 9.99999974E-6 : f32
    %320 = vector.broadcast %cst_137 : f32 to vector<16x1xf32>
    %321 = arith.addf %319, %320 : vector<16x1xf32>
    %322 = math.rsqrt %321 : vector<16x1xf32>
    %323 = vector.broadcast %322 : vector<16x1xf32> to vector<16x64xf32>
    %324 = arith.mulf %314, %323 : vector<16x64xf32>
    %c1_138 = arith.constant 1 : index
    %c0_139 = arith.constant 0 : index
    %c0_140 = arith.constant 0 : index
    %325 = vector.load %arg15[%c1_138, %c0_139, %c0_140] : memref<2x64x128xf32, #tpu.memory_space<vmem>>, vector<1x64x128xf32>
    %326 = vector.shape_cast %325 : vector<1x64x128xf32> to vector<64x128xf32>
    %cst_141 = arith.constant dense<0.000000e+00> : vector<16x128xf32>
    %327 = tpu.matmul %324, %326, %cst_141 {dimension_numbers = #tpu.dot_dimension_numbers<[1], [0], [0], [1], [0, 0, 1, 1], [], []>} : vector<16x64xf32>, vector<64x128xf32>, vector<16x128xf32> -> vector<16x128xf32>
    %c1_142 = arith.constant 1 : index
    %c0_143 = arith.constant 0 : index
    %c0_144 = arith.constant 0 : index
    %328 = vector.load %arg16[%c1_142, %c0_143, %c0_144] : memref<2x1x128xf32, #tpu.memory_space<vmem>>, vector<1x1x128xf32>
    %329 = vector.shape_cast %328 : vector<1x1x128xf32> to vector<1x128xf32>
    %330 = vector.broadcast %329 : vector<1x128xf32> to vector<16x128xf32>
    %331 = arith.addf %327, %330 : vector<16x128xf32>
    %cst_145 = arith.constant 0.000000e+00 : f32
    %332 = vector.broadcast %cst_145 : f32 to vector<16x128xf32>
    %333 = arith.maximumf %331, %332 : vector<16x128xf32>
    %c1_146 = arith.constant 1 : index
    %c0_147 = arith.constant 0 : index
    %c0_148 = arith.constant 0 : index
    %334 = vector.load %arg17[%c1_146, %c0_147, %c0_148] : memref<2x128x64xf32, #tpu.memory_space<vmem>>, vector<1x128x64xf32>
    %335 = vector.shape_cast %334 : vector<1x128x64xf32> to vector<128x64xf32>
    %cst_149 = arith.constant dense<0.000000e+00> : vector<16x64xf32>
    %336 = tpu.matmul %333, %335, %cst_149 {dimension_numbers = #tpu.dot_dimension_numbers<[1], [0], [0], [1], [0, 0, 1, 1], [], []>} : vector<16x128xf32>, vector<128x64xf32>, vector<16x64xf32> -> vector<16x64xf32>
    %c1_150 = arith.constant 1 : index
    %c0_151 = arith.constant 0 : index
    %c0_152 = arith.constant 0 : index
    %337 = vector.load %arg18[%c1_150, %c0_151, %c0_152] : memref<2x1x64xf32, #tpu.memory_space<vmem>>, vector<1x1x64xf32>
    %338 = vector.shape_cast %337 : vector<1x1x64xf32> to vector<1x64xf32>
    %339 = vector.broadcast %338 : vector<1x64xf32> to vector<16x64xf32>
    %340 = arith.addf %336, %339 : vector<16x64xf32>
    %341 = arith.addf %308, %340 : vector<16x64xf32>
    %c0_153 = arith.constant 0 : index
    %c0_154 = arith.constant 0 : index
    %342 = vector.load %arg6[%c0_153, %c0_154] : memref<2x16xf32, #tpu.memory_space<vmem>>, vector<2x16xf32>
    %cst_155 = arith.constant dense<0.000000e+00> : vector<2x64xf32>
    %343 = tpu.matmul %342, %341, %cst_155 {dimension_numbers = #tpu.dot_dimension_numbers<[1], [0], [0], [1], [0, 0, 1, 1], [], []>} : vector<2x16xf32>, vector<16x64xf32>, vector<2x64xf32> -> vector<2x64xf32>
    %c0_156 = arith.constant 0 : index
    %c0_157 = arith.constant 0 : index
    %344 = vector.load %arg19[%c0_156, %c0_157] : memref<2x64xf32, #tpu.memory_space<vmem>>, vector<2x64xf32>
    tpu.vector_store %arg19[%c0_156, %c0_157], %343 {strides = array<i32>} : memref<2x64xf32, #tpu.memory_space<vmem>>, vector<2x64xf32>,
    return
  }
  func.func @transform_0(%arg0: i32) -> (i32, i32) {
    %c0_i32 = arith.constant 0 : i32
    %c0_i32_0 = arith.constant 0 : i32
    %c0_i32_1 = arith.constant 0 : i32
    return %c0_i32, %c0_i32_0 : i32, i32
  }
  func.func @transform_1(%arg0: i32) -> (i32, i32) {
    %c0_i32 = arith.constant 0 : i32
    %c0_i32_0 = arith.constant 0 : i32
    %c0_i32_1 = arith.constant 0 : i32
    return %c0_i32, %c0_i32_0 : i32, i32
  }
  func.func @transform_2(%arg0: i32) -> (i32, i32) {
    %c0_i32 = arith.constant 0 : i32
    %c0_i32_0 = arith.constant 0 : i32
    %c0_i32_1 = arith.constant 0 : i32
    return %c0_i32, %c0_i32_0 : i32, i32
  }
  func.func @transform_3(%arg0: i32) -> (i32, i32) {
    %c0_i32 = arith.constant 0 : i32
    %c0_i32_0 = arith.constant 0 : i32
    %c0_i32_1 = arith.constant 0 : i32
    return %c0_i32, %c0_i32_0 : i32, i32
  }
  func.func @transform_4(%arg0: i32) -> (i32, i32) {
    %c0_i32 = arith.constant 0 : i32
    %c0_i32_0 = arith.constant 0 : i32
    %c0_i32_1 = arith.constant 0 : i32
    return %c0_i32, %c0_i32_0 : i32, i32
  }
  func.func @transform_5(%arg0: i32) -> (i32, i32) {
    %c0_i32 = arith.constant 0 : i32
    %c0_i32_0 = arith.constant 0 : i32
    %c0_i32_1 = arith.constant 0 : i32
    return %c0_i32, %c0_i32_0 : i32, i32
  }
  func.func @transform_6(%arg0: i32) -> (i32, i32) {
    %c0_i32 = arith.constant 0 : i32
    %c0_i32_0 = arith.constant 0 : i32
    %c0_i32_1 = arith.constant 0 : i32
    return %c0_i32, %c0_i32_0 : i32, i32
  }
  func.func @transform_7(%arg0: i32) -> (i32, i32) {
    %c0_i32 = arith.constant 0 : i32
    %c0_i32_0 = arith.constant 0 : i32
    %c0_i32_1 = arith.constant 0 : i32
    return %c0_i32, %c0_i32_0 : i32, i32
  }
  func.func @transform_8(%arg0: i32) -> (i32, i32) {
    %c0_i32 = arith.constant 0 : i32
    %c0_i32_0 = arith.constant 0 : i32
    %c0_i32_1 = arith.constant 0 : i32
    return %c0_i32, %c0_i32_0 : i32, i32
  }
  func.func @transform_9(%arg0: i32) -> (i32, i32) {
    %c0_i32 = arith.constant 0 : i32
    %c0_i32_0 = arith.constant 0 : i32
    %c0_i32_1 = arith.constant 0 : i32
    return %c0_i32, %c0_i32_0 : i32, i32
  }
  func.func @transform_10(%arg0: i32) -> (i32, i32, i32) {
    %c0_i32 = arith.constant 0 : i32
    %c0_i32_0 = arith.constant 0 : i32
    %c0_i32_1 = arith.constant 0 : i32
    %c0_i32_2 = arith.constant 0 : i32
    return %c0_i32, %c0_i32_0, %c0_i32_1 : i32, i32, i32
  }
  func.func @transform_11(%arg0: i32) -> (i32, i32, i32) {
    %c0_i32 = arith.constant 0 : i32
    %c0_i32_0 = arith.constant 0 : i32
    %c0_i32_1 = arith.constant 0 : i32
    %c0_i32_2 = arith.constant 0 : i32
    return %c0_i32, %c0_i32_0, %c0_i32_1 : i32, i32, i32
  }
  func.func @transform_12(%arg0: i32) -> (i32, i32, i32) {
    %c0_i32 = arith.constant 0 : i32
    %c0_i32_0 = arith.constant 0 : i32
    %c0_i32_1 = arith.constant 0 : i32
    %c0_i32_2 = arith.constant 0 : i32
    return %c0_i32, %c0_i32_0, %c0_i32_1 : i32, i32, i32
  }
  func.func @transform_13(%arg0: i32) -> (i32, i32, i32) {
    %c0_i32 = arith.constant 0 : i32
    %c0_i32_0 = arith.constant 0 : i32
    %c0_i32_1 = arith.constant 0 : i32
    %c0_i32_2 = arith.constant 0 : i32
    return %c0_i32, %c0_i32_0, %c0_i32_1 : i32, i32, i32
  }
  func.func @transform_14(%arg0: i32) -> (i32, i32, i32) {
    %c0_i32 = arith.constant 0 : i32
    %c0_i32_0 = arith.constant 0 : i32
    %c0_i32_1 = arith.constant 0 : i32
    %c0_i32_2 = arith.constant 0 : i32
    return %c0_i32, %c0_i32_0, %c0_i32_1 : i32, i32, i32
  }
  func.func @transform_15(%arg0: i32) -> (i32, i32, i32) {
    %c0_i32 = arith.constant 0 : i32
    %c0_i32_0 = arith.constant 0 : i32
    %c0_i32_1 = arith.constant 0 : i32
    %c0_i32_2 = arith.constant 0 : i32
    return %c0_i32, %c0_i32_0, %c0_i32_1 : i32, i32, i32
  }
  func.func @transform_16(%arg0: i32) -> (i32, i32, i32) {
    %c0_i32 = arith.constant 0 : i32
    %c0_i32_0 = arith.constant 0 : i32
    %c0_i32_1 = arith.constant 0 : i32
    %c0_i32_2 = arith.constant 0 : i32
    return %c0_i32, %c0_i32_0, %c0_i32_1 : i32, i32, i32
  }
  func.func @transform_17(%arg0: i32) -> (i32, i32, i32) {
    %c0_i32 = arith.constant 0 : i32
    %c0_i32_0 = arith.constant 0 : i32
    %c0_i32_1 = arith.constant 0 : i32
    %c0_i32_2 = arith.constant 0 : i32
    return %c0_i32, %c0_i32_0, %c0_i32_1 : i32, i32, i32
  }
  func.func @transform_18(%arg0: i32) -> (i32, i32) {
    %c0_i32 = arith.constant 0 : i32
    %c0_i32_0 = arith.constant 0 : i32
    %c0_i32_1 = arith.constant 0 : i32
    return %c0_i32, %c0_i32_0 : i32, i32
  }
}

</mosaic_0001>

<bundles_post_ra>
// kernel: tpu_custom_call.1
= control target key start
LH: loop header
LB: loop body
LE: loop exit
PB: predicated region body
PF: predicated region fallthrough
CT: control target
= control target key end

     0   :  { %s3237_s0 = inlined_call_operand.vmem [shape: f32[16,16], index: 0, kind: input, shape index: {}]   ;;  %s3238_s1 = inlined_call_operand.vmem [shape: f32[16,1], index: 1, kind: input, shape index: {}]   ;;  %s3239_s2 = inlined_call_operand.hbm [shape: f32[16,64], index: 2, kind: input, shape index: {}]   ;;  %s3240_s3 = inlined_call_operand.hbm [shape: f32[16,16], index: 3, kind: input, shape index: {}]   ;;  %s3241_s4 = inlined_call_operand.hbm [shape: f32[16,16], index: 4, kind: input, shape index: {}]   ;;  %s3242_s5 = inlined_call_operand.vmem [shape: f32[2,16], index: 5, kind: input, shape index: {}]   ;;  %s3243_s6 = inlined_call_operand.hbm [shape: f32[16,64], index: 6, kind: input, shape index: {}]   ;;  %s3244_s7 = inlined_call_operand.hbm [shape: f32[1,64], index: 7, kind: input, shape index: {}]   ;;  %s3245_s8 = inlined_call_operand.hbm [shape: f32[64,64], index: 8, kind: input, shape index: {}]   ;;  %s3246_s9 = inlined_call_operand.hbm [shape: f32[1,64], index: 9, kind: input, shape index: {}]   ;;  %s3247_s10 = inlined_call_operand.vmem [shape: f32[2,64,192], index: 10, kind: input, shape index: {}]   ;;  %s3248_s11 = inlined_call_operand.vmem [shape: f32[2,1,192], index: 11, kind: input, shape index: {}]   ;;  %s3249_s12 = inlined_call_operand.vmem [shape: f32[2,64,64], index: 12, kind: input, shape index: {}]   ;;  %s3250_s13 = inlined_call_operand.vmem [shape: f32[2,1,64], index: 13, kind: input, shape index: {}]   ;;  %s3251_s14 = inlined_call_operand.hbm [shape: f32[2,64,128], index: 14, kind: input, shape index: {}]   ;;  %s3252_s15 = inlined_call_operand.vmem [shape: f32[2,1,128], index: 15, kind: input, shape index: {}]   ;;  %s3253_s16 = inlined_call_operand.vmem [shape: f32[2,128,64], index: 16, kind: input, shape index: {}]   ;;  %s3254_s17 = inlined_call_operand.vmem [shape: f32[2,1,64], index: 17, kind: input, shape index: {}]   ;;  %s3255_s18 = inlined_call_operand.hbm [shape: f32[2,64], index: 18, kind: output, shape index: {}]  }
   0x1   :  { %3258 = sst [smem:[#allocation23_spill]] %s3237_s0 }
   0x2   :  { %3259 = sst [smem:[#allocation24_spill]] %s3238_s1 }
   0x3   :  { %3260 = sst [smem:[#allocation25_spill]] %s3239_s2 }
   0x4   :  { %23 = vsyncpa [#allocation3], 0 }
   0x5   :  { %24 = vsyncpa [#allocation6], 0 }
   0x6   :  { %25 = vsyncpa [#allocation9], 0 }
   0x7   :  { %26 = vsyncpa [#allocation12], 0 }
   0x8   :  { %27 = vsyncpa [#allocation15], 0 }
   0x9   :  { %28 = vsyncpa [#allocation4], 0  ;;  %s50_s29 = sshll.u32 %s3240_s3, 4  ;;  %s2429_s30 = smov [#allocation5]   ;;  %s51_s29 = int_to_ptr.hbm [resolvable:$true] %s50_s29 }
   0xa   :  { %s52_s0 = sshll.u32 %s2429_s30, 4  ;;  %s78_s20 = sshll.u32 %s3243_s6, 4  ;;  %s53_s0 = int_to_ptr.vmem [resolvable:$true] %s52_s0  ;;  %s79_s20 = int_to_ptr.hbm [resolvable:$true] %s78_s20 }
   0xb   :  { %s2430_s21 = smov 128   ;;  %s2431_s22 = smov 8  }
   0xc   :  { %58 = dma.hbm_to_vmem [thread:$0]  %s51_s29, 256, %s53_s0, [#allocation6], %s2430_s21, %s2430_s21, %s2431_s22  }
   0xd   :  { %s2432_s2 = smov [#allocation8]   ;;  %s102_s3 = sshll.u32 %s3245_s8, 4  ;;  %s103_s3 = int_to_ptr.hbm [resolvable:$true] %s102_s3 }
   0xe   :  { %s80_s23 = sshll.u32 %s2432_s2, 4  ;;  %s3261_s27 = sld [smem:[#allocation25_spill]]  ;;  %s81_s23 = int_to_ptr.vmem [resolvable:$true] %s80_s23 }
   0xf   :  { %86 = dma.hbm_to_vmem [thread:$0]  %s79_s20, 256, %s81_s23, [#allocation9], %s2430_s21, %s2430_s21, %s2431_s22  }
  0x10   :  { %s2433_s30 = smov [#allocation11]   ;;  %s2434_s29 = smov [#allocation2]  }
  0x11   :  { %s104_s19 = sshll.u32 %s2433_s30, 4  ;;  %s39_s8 = sshll.u32 %s2434_s29, 4  ;;  %s105_s19 = int_to_ptr.vmem [resolvable:$true] %s104_s19  ;;  %s40_s8 = int_to_ptr.vmem [resolvable:$true] %s39_s8 }
  0x12   :  { %110 = dma.hbm_to_vmem [thread:$0]  %s103_s3, 1024, %s105_s19, [#allocation12], %s2430_s21, %s2430_s21, %s2431_s22  }
  0x13   :  { %s63_s2 = sshll.u32 %s3241_s4, 4  ;;  %s92_s24 = sshll.u32 %s3244_s7, 4  ;;  %s64_s2 = int_to_ptr.hbm [resolvable:$true] %s63_s2  ;;  %s93_s24 = int_to_ptr.hbm [resolvable:$true] %s92_s24 }
  0x14   :  { %s37_s28 = sshll.u32 %s3261_s27, 4  ;;  %s2435_s25 = smov [#allocation7]   ;;  %s38_s28 = int_to_ptr.hbm [resolvable:$true] %s37_s28 }
  0x15   :  { %45 = dma.hbm_to_vmem [thread:$0]  %s38_s28, 256, %s40_s8, [#allocation3], %s2430_s21, %s2430_s21, %s2431_s22  }
  0x16   :  { %s65_s6 = sshll.u32 %s2435_s25, 4  ;;  %s2436_s3 = smov [#allocation10]   ;;  %s66_s6 = int_to_ptr.vmem [resolvable:$true] %s65_s6 }
  0x17   :  { %71 = dma.hbm_to_vmem [thread:$0]  %s64_s2, 256, %s66_s6, [#allocation6], %s2430_s21, %s2430_s21, %s2431_s22  }
  0x18   :  { %s94_s4 = sshll.u32 %s2436_s3, 4  ;;  %s116_s30 = sshll.u32 %s3246_s9, 4  ;;  %s95_s4 = int_to_ptr.vmem [resolvable:$true] %s94_s4  ;;  %s117_s30 = int_to_ptr.hbm [resolvable:$true] %s116_s30 }
  0x19   :  { %97 = dma.hbm_to_vmem [thread:$0]  %s93_s24, 16, %s95_s4, [#allocation9]  }
  0x1a   :  { %s134_s7 = sshll.u32 %s3251_s14, 4  ;;  %s2437_s29 = smov [#allocation13]   ;;  %s135_s7 = int_to_ptr.hbm [resolvable:$true] %s134_s7 }
  0x1b   :  { %s118_s8 = sshll.u32 %s2437_s29, 4  ;;  %s2438_s0 = smov [#allocation14]   ;;  %s119_s8 = int_to_ptr.vmem [resolvable:$true] %s118_s8 }
  0x1c   :  { %121 = dma.hbm_to_vmem [thread:$0]  %s117_s30, 16, %s119_s8, [#allocation12]  }
  0x1d   :  { %s136_s1 = sshll.u32 %s2438_s0, 4  ;;  %s137_s1 = int_to_ptr.vmem [resolvable:$true] %s136_s1 }
  0x1e   :  { %142 = dma.hbm_to_vmem [thread:$0]  %s135_s7, 2048, %s137_s1, [#allocation15], %s2430_s21, %s2430_s21, %s2431_s22  }
  0x1f   :  { %2417 = dma.done.wait [#allocation3], 256  }
  0x20   :  { %2418 = vsyncadd [#allocation3], 4294967040 }
  0x21   :  { %2419 = dma.done.wait [#allocation6], 512  }
  0x22   :  { %2420 = vsyncadd [#allocation6], 4294966784 }
  0x23   :  { %2421 = dma.done.wait [#allocation9], 272  }
  0x24   :  { %2422 = vsyncadd [#allocation9], 4294967024 }
  0x25   :  { %2423 = dma.done.wait [#allocation12], 1040  }
  0x26   :  { %2424 = vsyncadd [#allocation12], 4294966256 }
  0x27   :  { %2425 = dma.done.wait [#allocation15], 2048  }
  0x28   :  { %2426 = vsyncadd [#allocation15], 4294965248  ;;  %v184_v0 = vld [vmem:[#allocation8 + $0x8] sm:$0xff]  ;;  %v183_v1 = vld [vmem:[#allocation8] sm:$0xff]  ;;  %s3262_s2 = sld [smem:[#allocation23_spill]]  ;;  %vm189_vm0 = vcmask 130048  }
  0x29   :  { %210 = vmatpush.msra.mxu0 %v184_v0  ;;  %v228_v3 = vld [vmem:[#allocation11 + $0x38] sm:$0xff]  ;;  %v227_v4 = vld [vmem:[#allocation11 + $0x30] sm:$0xff]  ;;  %v226_v5 = vld [vmem:[#allocation11 + $0x28] sm:$0xff]  ;;  %v2439_v12 = vmov 0   ;;  %s3263_s24 = sld [smem:[#allocation24_spill]]  ;;  %vm233_vm1 = vcmask 523264  }
  0x2a   :  { %248 = vmatpush.msra.mxu1 %v228_v3  ;;  %v225_v6 = vld [vmem:[#allocation11 + $0x20] sm:$0xff]  ;;  %v224_v7 = vld [vmem:[#allocation11 + $0x18] sm:$0xff]  ;;  %v223_v9 = vld [vmem:[#allocation11 + $0x10] sm:$0xff]  ;;  %2078 = vset.pattern.permute.xlu0 %v2439_v12  ;;  %v2440_v37 = vmov 64.0   ;;  %s2441_s9 = smov 64   ;;  %s2442_s14 = smov 48  }
  0x2b   :  { %211 = vmatpush.msra.mxu0 %v183_v1  ;;  %v222_v10 = vld [vmem:[#allocation11 + $0x8] sm:$0xff]  ;;  %v221_v11 = vld [vmem:[#allocation11] sm:$0xff]  ;;  %v2109_v15 = vld [vmem:[#allocation10] ss:$0 sm:$0xff]  ;;  %2117 = vrcp.f32 %v2440_v37  ;;  %s2444_s21 = smov 32   ;;  %s2445_s22 = smov 16  }
  0x2c   :  { %249 = vmatpush.msra.mxu1 %v227_v4  ;;  %v2110_v22 = vld [vmem:[#allocation13] ss:$0 sm:$0xff]  ;;  %v278_v33 = vld [vmem:[#allocation2 + $0x8] sm:$0xff]  ;;  %v352_v54 = vld [vmem:[%s3247_s10 + $0x70] sm:$0xff]  ;;  %s2446_s20 = smov 80   ;;  %s2447_s23 = smov 96  }
  0x2d   :  { %v277_v26 = vld [vmem:[#allocation2] sm:$0xff]  ;;  %v353_v55 = vld [vmem:[%s3247_s10 + $0x78] sm:$0xff]  ;;  %374 = vmatpush.msrb.mxu0 %v352_v54  ;;  %v351_v57 = vld [vmem:[%s3247_s10 + $0x68] sm:$0xff] }
  0x2e   :  { %v181_v2 = vld [vmem:[%s3262_s2] sm:$0xff]  ;;  %250 = vmatpush.msra.mxu1 %v226_v5  ;;  %v182_v8 = vld [vmem:[%s3262_s2 + $0x8] sm:$0xff]  ;;  %397 = vmatpush.msra.mxu3 %v353_v55  ;;  %v348_v58 = vld [vmem:[%s3247_s10 + $0x50] sm:$0xff]  ;;  %s2443_s2 = smov 112  }
  0x2f   :  { %1931 = vmatmul.msk.f32.vlgmr.msra.gmra.mxu0 %vm189_vm0, %v181_v2  ;;  %v263_v13 = vld [vmem:[%s3263_s24] sm:$0xff]  ;;  %v264_v14 = vld [vmem:[%s3263_s24 + $0x8] sm:$0xff]  ;;  %v349_v59 = vld [vmem:[%s3247_s10 + $0x58] sm:$0xff] }
  0x30   :  { %251 = vmatpush.msra.mxu1 %v225_v6  ;;  %267 = vperm.xlu0 %2078, %v263_v13   ;;  %v350_v56 = vld [vmem:[%s3247_s10 + $0x60] sm:$0xff]  ;;  %v347_v61 = vld [vmem:[%s3247_s10 + $0x48] sm:$0xff]  ;;  %v344_v62 = vld [vmem:[%s3247_s10 + $0x30] sm:$0xff] }
  0x31   :  { %v2118_v38 = vpop.eup %2117  ;;  %375 = vmatpush.msrb.mxu0 %v350_v56  ;;  %398 = vmatpush.msra.mxu3 %v351_v57  ;;  %v346_v60 = vld [vmem:[%s3247_s10 + $0x40] sm:$0xff]  ;;  %v345_v63 = vld [vmem:[%s3247_s10 + $0x38] sm:$0xff]  ;;  %v343_v1 = vld [vmem:[%s3247_s10 + $0x28] sm:$0xff] }
  0x32   :  { %252 = vmatpush.msra.mxu1 %v224_v7  ;;  %v294_v39 = vmul.f32 64.0, %v2118_v38  ;;  %vm298_vm2 = vweird.f32 %v2118_v38  ;;  %v342_v0 = vld [vmem:[%s3247_s10 + $0x20] sm:$0xff]  ;;  %v340_v2 = vld [vmem:[%s3247_s10 + $0x10] sm:$0xff]  ;;  %v341_v3 = vld [vmem:[%s3247_s10 + $0x18] sm:$0xff] }
  0x33   :  { %376 = vmatpush.msrb.mxu0 %v348_v58  ;;  %399 = vmatpush.msra.mxu3 %v349_v59  ;;  %v338_v4 = vld [vmem:[%s3247_s10] sm:$0xff]  ;;  %v339_v5 = vld [vmem:[%s3247_s10 + $0x8] sm:$0xff]  ;;  %v2724_v57 = vld [vmem:[#allocation5 + $0x8] sm:$0xff] }
  0x34   :  { %253 = vmatpush.msra.mxu1 %v223_v9  ;;  %v295_v40 = vsub.f32 1.0, %v294_v39  ;;  %v2722_v56 = vld [vmem:[#allocation7 + $0x8] sm:$0xff] }
  0x35   :  { %377 = vmatpush.msrb.mxu0 %v346_v60  ;;  %400 = vmatpush.msra.mxu3 %v347_v61  ;;  %vm286_vm10 = vcmp.gt.f32.partialorder %v2722_v56, 0.0 }
  0x36   :  { %254 = vmatpush.msra.mxu1 %v222_v10  ;;  %v296_v41 = vmul.f32 %v2118_v38, %v295_v40 }
  0x37   :  { %1932 = vmatmul.msk.f32.gmra.mxu0 %vm189_vm0, %v182_v8  ;;  %401 = vmatpush.msra.mxu3 %v345_v63 }
  0x38   :  { %255 = vmatpush.msra.mxu1 %v221_v11  ;;  %272 = vperm.xlu0 %2078, %v264_v14   ;;  %v297_v42 = vadd.f32 %v2118_v38, %v296_v41 }
  0x39   :  { %378 = vmatpush.msrb.mxu0 %v344_v62  ;;  %402 = vmatpush.msra.mxu3 %v343_v1 }
  0x3a   :  { %v2610_v43 = vsel %vm298_vm2, %v2118_v38, %v297_v42 }
  0x3b   :  { %379 = vmatpush.msrb.mxu0 %v342_v0  ;;  %403 = vmatpush.msra.mxu3 %v341_v3 }
  0x3d   :  { %380 = vmatpush.msrb.mxu0 %v340_v2  ;;  %404 = vmatpush.msra.mxu3 %v339_v5 }
  0x3f   :  { %381 = vmatpush.msrb.mxu0 %v338_v4 }
  0xa2   :  { %v268_v23 = vpop.permute.xlu0 %267 }
  0xaa   :  { %v273_v32 = vpop.permute.xlu0 %272 }
  0xac   :  { %v213_v16 = vpop.f32.mrf.mxu0 }
  0xad   :  { %v214_v17 = vadd.f32 %v2109_v15, %v213_v16 }
  0xaf   :  { %v219_v18 = vmax.f32 %v214_v17, 0.0 }
  0xb1   :  { %1933 = vmatmul.msk.f32.vlgmr.msra.gmra.mxu1 %vm233_vm1, %v219_v18 }
  0xb4   :  { %v216_v19 = vpop.f32.mrf.mxu0 }
  0xb5   :  { %v217_v20 = vadd.f32 %v2109_v15, %v216_v19 }
  0xb7   :  { %v220_v21 = vmax.f32 %v217_v20, 0.0 }
  0xb9   :  { %1934 = vmatmul.msk.f32.gmra.mxu1 %vm233_vm1, %v220_v21 }
 0x12e   :  { %v257_v24 = vpop.f32.mrf.mxu1 }
 0x12f   :  { %v258_v25 = vadd.f32 %v2110_v22, %v257_v24 }
 0x131   :  { %v275_v27 = vmul.f32 %v268_v23, %v258_v25 }
 0x133   :  { %v2602_v28 = vadd.f32 %v277_v26, %v275_v27 }
 0x135   :  { %v287_v29 = vsel %vm233_vm1, %v2602_v28, 0.0 }
 0x136   :  { %v260_v30 = vpop.f32.mrf.mxu1  ;;  %288 = vadd.xlane.f32.xlu1 %v287_v29  ;;  %v354_v29 = vld [vmem:[%s3248_s11] sm:$0x3] }
 0x137   :  { %v261_v31 = vadd.f32 %v2110_v22, %v260_v30  ;;  %v356_v30 = vperm.slane %v354_v29, 0  ;;  %v357_v37 = vperm.slane %v354_v29, 1 }
 0x139   :  { %v276_v34 = vmul.f32 %v273_v32, %v261_v31 }
 0x13b   :  { %v2606_v35 = vadd.f32 %v278_v33, %v276_v34 }
 0x13d   :  { %v290_v36 = vsel %vm233_vm1, %v2606_v35, 0.0 }
 0x13e   :  { %291 = vadd.xlane.f32.xlu1 %v290_v36 }
 0x1a9   :  { %v289_v44 = vpop.xlane.xlu1 %288 }
 0x1aa   :  { %v300_v45 = vmul.f32 %v2610_v43, %v289_v44 }
 0x1ac   :  { %v2614_v46 = vsub.f32 %v2602_v28, %v300_v45 }
 0x1ae   :  { %v304_v47 = vmul.f32 %v2614_v46, %v2614_v46 }
 0x1b0   :  { %v306_v48 = vsel %vm233_vm1, %v304_v47, 0.0 }
 0x1b1   :  { %307 = vadd.xlane.f32.xlu2 %v306_v48  ;;  %v292_v49 = vpop.xlane.xlu1 %291 }
 0x1b2   :  { %v301_v50 = vmul.f32 %v2610_v43, %v292_v49  ;;  %v2713_v49 = vld [vmem:[#allocation7] sm:$0xff] }
 0x1b3   :  { %vm285_vm9 = vcmp.gt.f32.partialorder %v2713_v49, 0.0 }
 0x1b4   :  { %v2621_v51 = vsub.f32 %v2606_v35, %v301_v50  ;;  %v2715_v50 = vld [vmem:[#allocation5] sm:$0xff] }
 0x1b6   :  { %v305_v52 = vmul.f32 %v2621_v51, %v2621_v51 }
 0x1b8   :  { %v309_v53 = vsel %vm233_vm1, %v305_v52, 0.0 }
 0x1b9   :  { %310 = vadd.xlane.f32.xlu2 %v309_v53 }
 0x224   :  { %v308_v6 = vpop.xlane.xlu2 %307 }
 0x225   :  { %v312_v7 = vmul.f32 %v308_v6, %v2610_v43 }
 0x227   :  { %v314_v8 = vadd.f32 1e-05, %v312_v7 }
 0x229   :  { %2119 = vrsqrt.f32 %v314_v8  ;;  %vm322_vm4 = vweird.f32 %v314_v8 }
 0x22c   :  { %v311_v9 = vpop.xlane.xlu2 %310 }
 0x22d   :  { %v313_v10 = vmul.f32 %v311_v9, %v2610_v43 }
 0x22f   :  { %v2120_v11 = vpop.eup %2119  ;;  %v315_v12 = vadd.f32 1e-05, %v313_v10 }
 0x230   :  { %v317_v13 = vmul.f32 %v2120_v11, %v314_v8  ;;  %vm323_vm3 = vweird.f32 %v2120_v11 }
 0x231   :  { %2121 = vrsqrt.f32 %v315_v12  ;;  %vm324_vm5 = vmor %vm322_vm4, %vm323_vm3  ;;  %vm332_vm7 = vweird.f32 %v315_v12 }
 0x232   :  { %v318_v14 = vmul.f32 %v2120_v11, %v317_v13 }
 0x234   :  { %v319_v15 = vmul.f32 0.5, %v318_v14 }
 0x236   :  { %v320_v16 = vsub.f32 1.5, %v319_v15 }
 0x237   :  { %v2122_v17 = vpop.eup %2121 }
 0x238   :  { %v321_v18 = vmul.f32 %v2120_v11, %v320_v16  ;;  %v327_v19 = vmul.f32 %v2122_v17, %v315_v12  ;;  %vm333_vm6 = vweird.f32 %v2122_v17 }
 0x239   :  { %vm334_vm8 = vmor %vm332_vm7, %vm333_vm6 }
 0x23a   :  { %v328_v20 = vmul.f32 %v2122_v17, %v327_v19  ;;  %v325_v21 = vsel %vm324_vm5, %v2120_v11, %v321_v18 }
 0x23b   :  { %v336_v22 = vmul.f32 %v325_v21, %v2614_v46 }
 0x23c   :  { %v329_v23 = vmul.f32 0.5, %v328_v20 }
 0x23d   :  { %1935 = vmatmul.msk.f32.vlgmr.msrb.gmra.mxu0 %vm233_vm1, %v336_v22  ;;  %1937 = vmatmul.msk.f32.vlgmr.msra.gmra.mxu3 %vm233_vm1, %v336_v22 }
 0x23e   :  { %v330_v24 = vsub.f32 1.5, %v329_v23 }
 0x240   :  { %v331_v25 = vmul.f32 %v2122_v17, %v330_v24  ;;  %v413_v24 = vld [vmem:[%s3249_s12 + $0x8] sm:$0xff] }
 0x241   :  { %539 = vmatpush.msra.mxu2 %v413_v24 }
 0x242   :  { %v335_v26 = vsel %vm334_vm8, %v2122_v17, %v331_v25  ;;  %v412_v25 = vld [vmem:[%s3249_s12] sm:$0xff] }
 0x243   :  { %v337_v27 = vmul.f32 %v335_v26, %v2621_v51  ;;  %540 = vmatpush.msra.mxu2 %v412_v25 }
 0x245   :  { %1936 = vmatmul.msk.f32.gmra.mxu0 %vm233_vm1, %v337_v27  ;;  %1938 = vmatmul.msk.f32.gmra.mxu3 %vm233_vm1, %v337_v27 }
 0x2ba   :  { %v383_v31 = vpop.f32.mrf.mxu0 }
 0x2bb   :  { %v2685_v32 = vadd.f32 %v383_v31, %v356_v30 }
 0x2bd   :  { %427 = vrot.lane.b32.xlu1 %v2685_v32, %s2441_s9 }
 0x2c0   :  { %v406_v33 = vpop.f32.mrf.mxu3 }
 0x2c1   :  { %v407_v39 = vadd.f32 %v406_v33, %v357_v37 }
 0x2c2   :  { %v386_v34 = vpop.f32.mrf.mxu0 }
 0x2c3   :  { %v2689_v36 = vadd.f32 %v386_v34, %v356_v30 }
 0x2c5   :  { %556 = vrot.lane.b32.xlu2 %v2689_v36, %s2442_s14  ;;  %429 = vrot.lane.b32.xlu0 %v2689_v36, %s2441_s9 }
 0x2c8   :  { %v409_v38 = vpop.f32.mrf.mxu3 }
 0x2c9   :  { %v410_v40 = vadd.f32 %v409_v38, %v357_v37 }
 0x2cb   :  { %510 = vmatpush.msrb.mxu1 %v410_v40  ;;  %v2695_v41 = vpack.i.bf16 %v407_v39, %v410_v40 }
 0x2cd   :  { %511 = vmatpush.msrb.mxu1 %v407_v39  ;;  %554 = vrot.lane.b32.xlu0 %v2685_v32, %s2442_s14 }
 0x2d5   :  { %550 = vrot.lane.b32.xlu0 %v2685_v32, %s2443_s2 }
 0x2dd   :  { %552 = vrot.lane.b32.xlu0 %v2689_v36, %s2443_s2 }
 0x31f   :  { %v557_v42 = vpop.permute.xlu2 %556 }
 0x320   :  { %1947 = vmatpush.xpose.msk.msrb.mxu3 %vm189_vm0, %v557_v42 }
 0x32f   :  { %v428_v45 = vpop.permute.xlu1 %427 }
 0x337   :  { %v430_v44 = vpop.permute.xlu0 %429 }
 0x338   :  { %1939 = vmatpush.xpose.msk.msra.mxu0 %vm189_vm0, %v430_v44 }
 0x33c   :  { %1940 = vmatpush.xpose.msk.msra.mxu0 %vm189_vm0, %v428_v45 }
 0x33f   :  { %v555_v46 = vpop.permute.xlu0 %554  ;;  %1941 = vmatmul.msk.f32.vlgmr.msra.gmra.mxu0 %vm189_vm0, %v2685_v32 }
 0x340   :  { %1948 = vmatpush.xpose.msk.msrb.mxu3 %vm189_vm0, %v555_v46 }
 0x347   :  { %v551_v47 = vpop.permute.xlu0 %550  ;;  %1942 = vmatmul.msk.f32.gmra.mxu0 %vm189_vm0, %v2689_v36 }
 0x348   :  { %1949 = vmatmul.msk.f32.vlgmr.msrb.gmra.mxu3 %vm189_vm0, %v551_v47 }
 0x34f   :  { %v553_v48 = vpop.permute.xlu0 %552 }
 0x350   :  { %1950 = vmatmul.msk.f32.gmra.mxu3 %vm189_vm0, %v553_v48 }
 0x3bc   :  { %v456_v51 = vpop.f32.mrf.mxu0 }
 0x3bd   :  { %v462_v52 = vmul.f32 0.25, %v456_v51  ;;  %v415_v51 = vld [vmem:[%s3249_s12 + $0x18] sm:$0xff] }
 0x3be   :  { %674 = vmatpush.msra.mxu1 %v415_v51 }
 0x3bf   :  { %v464_v53 = vadd.f32 %v462_v52, %v2715_v50  ;;  %v414_v52 = vld [vmem:[%s3249_s12 + $0x10] sm:$0xff] }
 0x3c0   :  { %675 = vmatpush.msra.mxu1 %v414_v52 }
 0x3c1   :  { %v466_v54 = vsel %vm285_vm9, %v464_v53, -1e+30 }
 0x3c2   :  { %v468_v55 = vsel %vm189_vm0, %v466_v54, -inf }
 0x3c3   :  { %469 = vmax.xlane.f32.xlu2 %v468_v55 }
 0x3c4   :  { %v459_v58 = vpop.f32.mrf.mxu0 }
 0x3c5   :  { %v463_v59 = vmul.f32 0.25, %v459_v58 }
 0x3c7   :  { %v465_v60 = vadd.f32 %v463_v59, %v2724_v57 }
 0x3c9   :  { %v467_v61 = vsel %vm286_vm10, %v465_v60, -1e+30 }
 0x3ca   :  { %v471_v62 = vsel %vm189_vm0, %v467_v61, -inf }
 0x3cb   :  { %v583_v63 = vpop.f32.mrf.mxu3  ;;  %472 = vmax.xlane.f32.xlu1 %v471_v62 }
 0x3cc   :  { %v589_v0 = vmul.f32 0.25, %v583_v63 }
 0x3ce   :  { %v591_v1 = vadd.f32 %v589_v0, %v2715_v50 }
 0x3d0   :  { %v593_v2 = vsel %vm285_vm9, %v591_v1, -1e+30 }
 0x3d1   :  { %v595_v3 = vsel %vm189_vm0, %v593_v2, -inf }
 0x3d3   :  { %596 = vmax.xlane.f32.xlu1 %v595_v3  ;;  %v586_v12 = vpop.f32.mrf.mxu3 }
 0x3d4   :  { %v590_v14 = vmul.f32 0.25, %v586_v12  ;;  %v2800_v12 = vld [vmem:[%s3250_s13] ss:$0 sm:$0xff] }
 0x3d6   :  { %v592_v19 = vadd.f32 %v590_v14, %v2724_v57 }
 0x3d8   :  { %v594_v20 = vsel %vm286_vm10, %v592_v19, -1e+30 }
 0x3d9   :  { %v598_v22 = vsel %vm189_vm0, %v594_v20, -inf }
 0x436   :  { %v470_v4 = vpop.xlane.xlu2 %469 }
 0x437   :  { %v474_v5 = vsub.f32 %v466_v54, %v470_v4 }
 0x439   :  { %v476_v6 = vmul.f32 1.442695, %v474_v5 }
 0x43b   :  { %2123 = vpow2.f32 %v476_v6 }
 0x43e   :  { %v473_v7 = vpop.xlane.xlu1 %472 }
 0x43f   :  { %v475_v8 = vsub.f32 %v467_v61, %v473_v7 }
 0x441   :  { %v2124_v9 = vpop.eup %2123  ;;  %v478_v10 = vmul.f32 1.442695, %v475_v8 }
 0x442   :  { %v480_v11 = vsel %vm189_vm0, %v2124_v9, 0.0 }
 0x443   :  { %2125 = vpow2.f32 %v478_v10  ;;  %481 = vadd.xlane.f32.xlu0 %v480_v11 }
 0x446   :  { %v597_v13 = vpop.xlane.xlu1 %596 }
 0x447   :  { %v601_v15 = vsub.f32 %v593_v2, %v597_v13 }
 0x449   :  { %v2126_v16 = vpop.eup %2125  ;;  %v603_v17 = vmul.f32 1.442695, %v601_v15 }
 0x44a   :  { %v483_v18 = vsel %vm189_vm0, %v2126_v16, 0.0 }
 0x44b   :  { %2127 = vpow2.f32 %v603_v17  ;;  %484 = vadd.xlane.f32.xlu2 %v483_v18 }
 0x451   :  { %v2128_v21 = vpop.eup %2127 }
 0x452   :  { %v607_v23 = vsel %vm189_vm0, %v2128_v21, 0.0 }
 0x453   :  { %599 = vmax.xlane.f32.xlu2 %v598_v22  ;;  %608 = vadd.xlane.f32.xlu0 %v607_v23 }
 0x467   :  { %691 = vrot.lane.b32.xlu0 %v2689_v36, %s2444_s21 }
 0x46b   :  { %2080 = vrot.lane.b32.xlu2 %v2695_v41, %s2443_s2 }
 0x46f   :  { %689 = vrot.lane.b32.xlu0 %v2685_v32, %s2444_s21 }
 0x473   :  { %822 = vrot.lane.b32.xlu2 %v2685_v32, %s2445_s22 }
 0x477   :  { %818 = vrot.lane.b32.xlu0 %v2685_v32, %s2446_s20 }
 0x47b   :  { %687 = vrot.lane.b32.xlu2 %v2689_v36, %s2447_s23 }
 0x4b6   :  { %v482_v26 = vpop.xlane.xlu0 %481 }
 0x4b7   :  { %2129 = vrcp.f32 %v482_v26 }
 0x4bd   :  { %v2130_v27 = vpop.eup %2129 }
 0x4be   :  { %v485_v29 = vpop.xlane.xlu2 %484  ;;  %v488_v30 = vmul.f32 %v2130_v27, %v2124_v9 }
 0x4bf   :  { %2131 = vrcp.f32 %v485_v29 }
 0x4c0   :  { %1943 = vmatmul.msk.f32.vlgmr.msrb.gmra.mxu1 %vm189_vm0, %v488_v30 }
 0x4c5   :  { %v2132_v31 = vpop.eup %2131 }
 0x4c6   :  { %v600_v33 = vpop.xlane.xlu2 %599  ;;  %v609_v34 = vpop.xlane.xlu0 %608  ;;  %v489_v37 = vmul.f32 %v2132_v31, %v2126_v16 }
 0x4c7   :  { %v602_v38 = vsub.f32 %v594_v20, %v600_v33  ;;  %2133 = vrcp.f32 %v609_v34 }
 0x4c8   :  { %1944 = vmatmul.msk.f32.gmra.mxu1 %vm189_vm0, %v489_v37 }
 0x4c9   :  { %v605_v39 = vmul.f32 1.442695, %v602_v38 }
 0x4cb   :  { %2135 = vpow2.f32 %v605_v39 }
 0x4cd   :  { %v2134_v42 = vpop.eup %2133 }
 0x4ce   :  { %v2081_v40 = vpop.permute.xlu2 %2080  ;;  %v615_v47 = vmul.f32 %v2134_v42, %v2128_v21 }
 0x4cf   :  { %v2082_v44 = vunpack.i.l.bf16 %v2081_v40  ;;  %v2083_v46 = vunpack.i.h.bf16 %v2081_v40 }
 0x4d1   :  { %v2136_v45 = vpop.eup %2135  ;;  %645 = vmatpush.msrb.mxu0 %v2082_v44  ;;  %2056 = vmatpush.msrb.mxu2 %v2082_v44 }
 0x4d2   :  { %v610_v48 = vsel %vm189_vm0, %v2136_v45, 0.0 }
 0x4d3   :  { %611 = vadd.xlane.f32.xlu1 %v610_v48  ;;  %646 = vmatpush.msrb.mxu0 %v2083_v46 }
 0x4d4   :  { %2057 = vmatpush.msrb.mxu2 %v2083_v46  ;;  %1951 = vmatmul.msk.f32.vlgmr.msrb.gmra.mxu0 %vm189_vm0, %v615_v47 }
 0x4d6   :  { %v823_v62 = vpop.permute.xlu2 %822 }
 0x4d9   :  { %v692_v53 = vpop.permute.xlu0 %691 }
 0x4de   :  { %v688_v0 = vpop.permute.xlu2 %687 }
 0x4ec   :  { %824 = vrot.lane.b32.xlu1 %v2689_v36, %s2445_s22 }
 0x4f4   :  { %685 = vrot.lane.b32.xlu1 %v2685_v32, %s2447_s23  ;;  %v690_v32 = vpop.permute.xlu0 %689 }
 0x4fc   :  { %820 = vrot.lane.b32.xlu1 %v2689_v36, %s2446_s20  ;;  %v819_v4 = vpop.permute.xlu0 %818 }
 0x53d   :  { %v513_v54 = vpop.f32.mrf.mxu1 }
 0x53e   :  { %1945 = vmatmul.msk.f32.vlgmr.msra.gmra.mxu2 %vm189_vm0, %v513_v54 }
 0x53f   :  { %1955 = vmatpush.xpose.msk.msra.mxu2 %vm189_vm0, %v692_v53 }
 0x543   :  { %1956 = vmatpush.xpose.msk.msra.mxu2 %vm189_vm0, %v690_v32 }
 0x545   :  { %v516_v36 = vpop.f32.mrf.mxu1 }
 0x546   :  { %1946 = vmatmul.msk.f32.gmra.mxu2 %vm189_vm0, %v516_v36  ;;  %v612_v55 = vpop.xlane.xlu1 %611 }
 0x547   :  { %2137 = vrcp.f32 %v612_v55 }
 0x54d   :  { %v2138_v58 = vpop.eup %2137 }
 0x54e   :  { %v616_v59 = vmul.f32 %v2138_v58, %v2136_v45 }
 0x550   :  { %1952 = vmatmul.msk.f32.vlgmr.msrb.gmra.mxu2 %vm189_vm0, %v616_v59 }
 0x551   :  { %v648_v60 = vpop.f32.mrf.mxu0 }
 0x552   :  { %1953 = vmatmul.msk.f32.vlgmr.msra.gmra.mxu1 %vm189_vm0, %v648_v60 }
 0x55e   :  { %v825_v61 = vpop.permute.xlu1 %824 }
 0x55f   :  { %1963 = vmatpush.xpose.msk.msrb.mxu1 %vm189_vm0, %v825_v61 }
 0x563   :  { %1964 = vmatpush.xpose.msk.msrb.mxu1 %vm189_vm0, %v823_v62 }
 0x566   :  { %v686_v63 = vpop.permute.xlu1 %685 }
 0x567   :  { %1957 = vmatmul.msk.f32.vlgmr.msra.gmra.mxu2 %vm189_vm0, %v686_v63 }
 0x56e   :  { %v821_v5 = vpop.permute.xlu1 %820 }
 0x56f   :  { %1958 = vmatmul.msk.f32.gmra.mxu2 %vm189_vm0, %v688_v0 }
 0x5c1   :  { %v2786_v1 = vpop.f32.mrf.mxu2 }
 0x5c9   :  { %v545_v2 = vpop.f32.mrf.mxu2 }
 0x5ca   :  { %v549_v13 = vadd.f32 %v2800_v12, %v545_v2 }
 0x5cf   :  { %v2795_v11 = vpop.f32.mrf.mxu1 }
 0x5d3   :  { %v651_v3 = vpop.f32.mrf.mxu2 }
 0x5d4   :  { %1954 = vmatmul.msk.f32.gmra.mxu1 %vm189_vm0, %v651_v3 }
 0x5dc   :  { %1965 = vmatmul.msk.f32.vlgmr.msrb.gmra.mxu1 %vm189_vm0, %v819_v4  ;;  %v417_v4 = vld [vmem:[%s3249_s12 + $0x28] sm:$0xff] }
 0x5dd   :  { %807 = vmatpush.msra.mxu0 %v417_v4 }
 0x5e4   :  { %1966 = vmatmul.msk.f32.gmra.mxu1 %vm189_vm0, %v821_v5 }
 0x5ea   :  { %v718_v6 = vpop.f32.mrf.mxu2 }
 0x5eb   :  { %v724_v7 = vmul.f32 0.25, %v718_v6 }
 0x5ed   :  { %v726_v8 = vadd.f32 %v724_v7, %v2715_v50 }
 0x5ef   :  { %v728_v9 = vsel %vm285_vm9, %v726_v8, -1e+30 }
 0x5f0   :  { %v730_v10 = vsel %vm189_vm0, %v728_v9, -inf }
 0x5f1   :  { %731 = vmax.xlane.f32.xlu2 %v730_v10 }
 0x5f2   :  { %v721_v16 = vpop.f32.mrf.mxu2 }
 0x5f3   :  { %v725_v19 = vmul.f32 0.25, %v721_v16  ;;  %v419_v16 = vld [vmem:[%s3249_s12 + $0x38] sm:$0xff] }
 0x5f5   :  { %v727_v23 = vadd.f32 %v725_v19, %v2724_v57 }
 0x5f7   :  { %v729_v29 = vsel %vm286_vm10, %v727_v23, -1e+30 }
 0x5f8   :  { %v733_v34 = vsel %vm189_vm0, %v729_v29, -inf }
 0x651   :  { %v680_v14 = vpop.f32.mrf.mxu1 }
 0x652   :  { %v2803_v15 = vadd.f32 %v680_v14, %v549_v13  ;;  %v416_v14 = vld [vmem:[%s3249_s12 + $0x20] sm:$0xff] }
 0x653   :  { %808 = vmatpush.msra.mxu0 %v416_v14  ;;  %v1048_v14 = vld [vmem:[%s3253_s16 + $0x40] sm:$0xff] }
 0x659   :  { %v851_v17 = vpop.f32.mrf.mxu1 }
 0x65a   :  { %v857_v18 = vmul.f32 0.25, %v851_v17 }
 0x65c   :  { %v859_v20 = vadd.f32 %v857_v18, %v2715_v50 }
 0x65e   :  { %v861_v21 = vsel %vm285_vm9, %v859_v20, -1e+30  ;;  %v418_v20 = vld [vmem:[%s3249_s12 + $0x30] sm:$0xff] }
 0x65f   :  { %v863_v22 = vsel %vm189_vm0, %v861_v21, -inf }
 0x660   :  { %864 = vmax.xlane.f32.xlu0 %v863_v22 }
 0x661   :  { %v854_v24 = vpop.f32.mrf.mxu1 }
 0x662   :  { %v858_v25 = vmul.f32 0.25, %v854_v24  ;;  %v548_v24 = vadd.f32 %v2800_v12, %v2786_v1 }
 0x664   :  { %v860_v26 = vadd.f32 %v858_v25, %v2724_v57  ;;  %v732_v27 = vpop.xlane.xlu2 %731 }
 0x665   :  { %v736_v30 = vsub.f32 %v728_v9, %v732_v27 }
 0x666   :  { %v862_v31 = vsel %vm286_vm10, %v860_v26, -1e+30  ;;  %v683_v26 = vadd.f32 %v2795_v11, %v548_v24  ;;  %v1044_v24 = vld [vmem:[%s3253_s16 + $0x20] sm:$0xff] }
 0x667   :  { %v738_v33 = vmul.f32 1.442695, %v736_v30  ;;  %v866_v37 = vsel %vm189_vm0, %v862_v31, -inf }
 0x668   :  { %734 = vmax.xlane.f32.xlu0 %v733_v34  ;;  %867 = vmax.xlane.f32.xlu1 %v866_v37 }
 0x669   :  { %2139 = vpow2.f32 %v738_v33 }
 0x66f   :  { %v2140_v38 = vpop.eup %2139 }
 0x670   :  { %v742_v39 = vsel %vm189_vm0, %v2140_v38, 0.0 }
 0x671   :  { %743 = vadd.xlane.f32.xlu1 %v742_v39 }
 0x67c   :  { %2085 = vrot.lane.b32.xlu0 %v2695_v41, %s2446_s20 }
 0x68a   :  { %2090 = vrot.lane.b32.xlu1 %v2695_v41, %s2447_s23 }
 0x6d3   :  { %v865_v40 = vpop.xlane.xlu0 %864 }
 0x6d4   :  { %v869_v42 = vsub.f32 %v861_v21, %v865_v40 }
 0x6d6   :  { %v871_v44 = vmul.f32 1.442695, %v869_v42 }
 0x6d8   :  { %2141 = vpow2.f32 %v871_v44 }
 0x6db   :  { %v868_v45 = vpop.xlane.xlu1 %867  ;;  %v735_v46 = vpop.xlane.xlu0 %734 }
 0x6dc   :  { %v870_v47 = vsub.f32 %v862_v31, %v868_v45  ;;  %v737_v52 = vsub.f32 %v729_v29, %v735_v46 }
 0x6de   :  { %v2142_v48 = vpop.eup %2141  ;;  %v873_v51 = vmul.f32 1.442695, %v870_v47  ;;  %v740_v54 = vmul.f32 1.442695, %v737_v52  ;;  %v1002_v52 = vld [vmem:[#allocation14 + $0x28] sm:$0xff] }
 0x6df   :  { %v875_v53 = vsel %vm189_vm0, %v2142_v48, 0.0 }
 0x6e0   :  { %876 = vadd.xlane.f32.xlu2 %v875_v53  ;;  %2143 = vpow2.f32 %v873_v51  ;;  %v1003_v51 = vld [vmem:[#allocation14 + $0x30] sm:$0xff]  ;;  %v1001_v53 = vld [vmem:[#allocation14 + $0x20] sm:$0xff] }
 0x6e1   :  { %2145 = vpow2.f32 %v740_v54  ;;  %v1000_v54 = vld [vmem:[#allocation14 + $0x18] sm:$0xff] }
 0x6e4   :  { %v744_v61 = vpop.xlane.xlu1 %743 }
 0x6e5   :  { %2147 = vrcp.f32 %v744_v61  ;;  %v1054_v61 = vld [vmem:[%s3253_s16 + $0x70] sm:$0xff] }
 0x6e6   :  { %v2144_v32 = vpop.eup %2143 }
 0x6e7   :  { %v878_v36 = vsel %vm189_vm0, %v2144_v32, 0.0  ;;  %v2146_v41 = vpop.eup %2145 }
 0x6e8   :  { %879 = vadd.xlane.f32.xlu2 %v878_v36  ;;  %v745_v59 = vsel %vm189_vm0, %v2146_v41, 0.0  ;;  %v998_v36 = vld [vmem:[#allocation14 + $0x8] sm:$0xff] }
 0x6eb   :  { %v2148_v63 = vpop.eup %2147 }
 0x6ec   :  { %v750_v3 = vmul.f32 %v2148_v63, %v2140_v38  ;;  %v1052_v63 = vld [vmem:[%s3253_s16 + $0x60] sm:$0xff] }
 0x6ee   :  { %v2086_v55 = vpop.permute.xlu0 %2085 }
 0x6ef   :  { %v2087_v58 = vunpack.i.l.bf16 %v2086_v55  ;;  %v2088_v60 = vunpack.i.h.bf16 %v2086_v55 }
 0x6f0   :  { %746 = vadd.xlane.f32.xlu2 %v745_v59 }
 0x6f1   :  { %911 = vmatpush.msrb.mxu2 %v2087_v58 }
 0x6f3   :  { %912 = vmatpush.msrb.mxu2 %v2088_v60  ;;  %v1055_v60 = vld [vmem:[%s3253_s16 + $0x78] sm:$0xff] }
 0x6f4   :  { %1060 = vmatpush.msra.mxu1 %v1055_v60 }
 0x6f6   :  { %1061 = vmatpush.msra.mxu1 %v1054_v61 }
 0x6fc   :  { %v2091_v62 = vpop.permute.xlu1 %2090 }
 0x6fd   :  { %v2092_v0 = vunpack.i.l.bf16 %v2091_v62  ;;  %v2093_v2 = vunpack.i.h.bf16 %v2091_v62  ;;  %v1053_v62 = vld [vmem:[%s3253_s16 + $0x68] sm:$0xff] }
 0x6fe   :  { %1062 = vmatpush.msra.mxu1 %v1053_v62  ;;  %v1987_v62 = vld [vmem:[%s3247_s10 + $0xf0] sm:$0xff] }
 0x6ff   :  { %778 = vmatpush.msra.mxu3 %v2092_v0  ;;  %1167 = vmatpush.msra.mxu2 %v1987_v62 }
 0x700   :  { %1063 = vmatpush.msra.mxu1 %v1052_v63  ;;  %v1988_v63 = vld [vmem:[%s3247_s10 + $0xf8] sm:$0xff] }
 0x701   :  { %779 = vmatpush.msra.mxu3 %v2093_v2 }
 0x702   :  { %1959 = vmatmul.msk.f32.vlgmr.msra.gmra.mxu3 %vm189_vm0, %v750_v3  ;;  %v1051_v3 = vld [vmem:[%s3253_s16 + $0x58] sm:$0xff] }
 0x703   :  { %940 = vmatpush.msrb.mxu3 %v419_v16  ;;  %1064 = vmatpush.msra.mxu1 %v1051_v3  ;;  %v1983_v3 = vld [vmem:[%s3247_s10 + $0xd0] sm:$0xff] }
 0x705   :  { %941 = vmatpush.msrb.mxu3 %v418_v20 }
 0x707   :  { %1190 = vmatpush.msra.mxu3 %v1988_v63 }
 0x753   :  { %v877_v5 = vpop.xlane.xlu2 %876 }
 0x754   :  { %2149 = vrcp.f32 %v877_v5 }
 0x75a   :  { %v2150_v6 = vpop.eup %2149 }
 0x75b   :  { %v883_v7 = vmul.f32 %v2150_v6, %v2142_v48  ;;  %v880_v8 = vpop.xlane.xlu2 %879  ;;  %v1004_v48 = vld [vmem:[#allocation14 + $0x38] sm:$0xff] }
 0x75c   :  { %2151 = vrcp.f32 %v880_v8  ;;  %1023 = vmatpush.msrb.mxu0 %v1004_v48 }
 0x75d   :  { %1967 = vmatmul.msk.f32.vlgmr.msrb.gmra.mxu2 %vm189_vm0, %v883_v7  ;;  %v1050_v7 = vld [vmem:[%s3253_s16 + $0x50] sm:$0xff] }
 0x75e   :  { %1024 = vmatpush.msrb.mxu0 %v1003_v51  ;;  %1065 = vmatpush.msra.mxu1 %v1050_v7  ;;  %v1979_v7 = vld [vmem:[%s3247_s10 + $0xb0] sm:$0xff] }
 0x760   :  { %1025 = vmatpush.msrb.mxu0 %v1002_v52 }
 0x762   :  { %v2152_v9 = vpop.eup %2151  ;;  %1026 = vmatpush.msrb.mxu0 %v1001_v53 }
 0x763   :  { %v747_v10 = vpop.xlane.xlu2 %746  ;;  %v884_v13 = vmul.f32 %v2152_v9, %v2144_v32  ;;  %v999_v32 = vld [vmem:[#allocation14 + $0x10] sm:$0xff] }
 0x764   :  { %2153 = vrcp.f32 %v747_v10  ;;  %1027 = vmatpush.msrb.mxu0 %v1000_v54  ;;  %v1049_v10 = vld [vmem:[%s3253_s16 + $0x48] sm:$0xff] }
 0x765   :  { %1968 = vmatmul.msk.f32.gmra.mxu2 %vm189_vm0, %v884_v13  ;;  %1066 = vmatpush.msra.mxu1 %v1049_v10  ;;  %v1978_v10 = vld [vmem:[%s3247_s10 + $0xa8] sm:$0xff] }
 0x766   :  { %1028 = vmatpush.msrb.mxu0 %v999_v32 }
 0x767   :  { %1067 = vmatpush.msra.mxu1 %v1048_v14  ;;  %v1976_v14 = vld [vmem:[%s3247_s10 + $0x98] sm:$0xff] }
 0x768   :  { %1029 = vmatpush.msrb.mxu0 %v998_v36 }
 0x76a   :  { %v2154_v17 = vpop.eup %2153 }
 0x76b   :  { %v751_v18 = vmul.f32 %v2154_v17, %v2146_v41  ;;  %v997_v41 = vld [vmem:[#allocation14] sm:$0xff]  ;;  %v1047_v17 = vld [vmem:[%s3253_s16 + $0x38] sm:$0xff] }
 0x76c   :  { %1030 = vmatpush.msrb.mxu0 %v997_v41  ;;  %1068 = vmatpush.msra.mxu1 %v1047_v17  ;;  %v1974_v17 = vld [vmem:[%s3247_s10 + $0x88] sm:$0xff] }
 0x76d   :  { %1960 = vmatmul.msk.f32.gmra.mxu3 %vm189_vm0, %v751_v18 }
 0x785   :  { %v781_v19 = vpop.f32.mrf.mxu3 }
 0x786   :  { %1961 = vmatmul.msk.f32.vlgmr.msra.gmra.mxu0 %vm189_vm0, %v781_v19  ;;  %v1046_v19 = vld [vmem:[%s3253_s16 + $0x30] sm:$0xff] }
 0x787   :  { %1069 = vmatpush.msra.mxu1 %v1046_v19 }
 0x7e0   :  { %v914_v21 = vpop.f32.mrf.mxu2 }
 0x7e1   :  { %1969 = vmatmul.msk.f32.vlgmr.msrb.gmra.mxu3 %vm189_vm0, %v914_v21 }
 0x7e8   :  { %v917_v22 = vpop.f32.mrf.mxu2 }
 0x7e9   :  { %1970 = vmatmul.msk.f32.gmra.mxu3 %vm189_vm0, %v917_v22  ;;  %v1045_v22 = vld [vmem:[%s3253_s16 + $0x28] sm:$0xff] }
 0x7ea   :  { %1070 = vmatpush.msra.mxu1 %v1045_v22 }
 0x7ec   :  { %1071 = vmatpush.msra.mxu1 %v1044_v24 }
 0x7f0   :  { %v784_v23 = vpop.f32.mrf.mxu3 }
 0x7f1   :  { %1962 = vmatmul.msk.f32.gmra.mxu0 %vm189_vm0, %v784_v23 }
 0x803   :  { %v810_v25 = vpop.f32.mrf.mxu0 }
 0x804   :  { %v816_v27 = vadd.f32 %v810_v25, %v683_v26  ;;  %v1043_v26 = vld [vmem:[%s3253_s16 + $0x18] sm:$0xff] }
 0x805   :  { %1072 = vmatpush.msra.mxu1 %v1043_v26 }
 0x864   :  { %v943_v29 = vpop.f32.mrf.mxu3 }
 0x865   :  { %v949_v30 = vadd.f32 %v943_v29, %v816_v27 }
 0x867   :  { %v2849_v31 = vadd.f32 %v949_v30, %v2602_v28 }
 0x869   :  { %v953_v33 = vsel %vm233_vm1, %v2849_v31, 0.0 }
 0x86a   :  { %954 = vadd.xlane.f32.xlu2 %v953_v33 }
 0x86c   :  { %v946_v38 = vpop.f32.mrf.mxu3 }
 0x86e   :  { %v813_v34 = vpop.f32.mrf.mxu0 }
 0x86f   :  { %v817_v37 = vadd.f32 %v813_v34, %v2803_v15 }
 0x871   :  { %v950_v39 = vadd.f32 %v946_v38, %v817_v37  ;;  %v1042_v37 = vld [vmem:[%s3253_s16 + $0x10] sm:$0xff]  ;;  %v1041_v38 = vld [vmem:[%s3253_s16 + $0x8] sm:$0xff] }
 0x872   :  { %1073 = vmatpush.msra.mxu1 %v1042_v37 }
 0x873   :  { %v2855_v1 = vadd.f32 %v950_v39, %v2606_v35  ;;  %v1040_v39 = vld [vmem:[%s3253_s16] sm:$0xff] }
 0x874   :  { %1074 = vmatpush.msra.mxu1 %v1041_v38 }
 0x875   :  { %v956_v11 = vsel %vm233_vm1, %v2855_v1, 0.0 }
 0x876   :  { %957 = vadd.xlane.f32.xlu0 %v956_v11  ;;  %1075 = vmatpush.msra.mxu1 %v1040_v39  ;;  %v2112_v11 = vld [vmem:[%s3252_s15] ss:$0 sm:$0xff] }
 0x8dd   :  { %v955_v12 = vpop.xlane.xlu2 %954 }
 0x8de   :  { %v959_v28 = vmul.f32 %v955_v12, %v2610_v43 }
 0x8e0   :  { %v961_v40 = vsub.f32 %v2849_v31, %v959_v28 }
 0x8e2   :  { %v963_v42 = vmul.f32 %v961_v40, %v961_v40 }
 0x8e4   :  { %v965_v44 = vsel %vm233_vm1, %v963_v42, 0.0 }
 0x8e5   :  { %966 = vadd.xlane.f32.xlu2 %v965_v44 }
 0x8e9   :  { %v958_v45 = vpop.xlane.xlu0 %957 }
 0x8ea   :  { %v960_v15 = vmul.f32 %v958_v45, %v2610_v43 }
 0x8ec   :  { %v2864_v46 = vsub.f32 %v2855_v1, %v960_v15  ;;  %v2113_v15 = vld [vmem:[%s3254_s17] ss:$0 sm:$0xff] }
 0x8ee   :  { %v964_v35 = vmul.f32 %v2864_v46, %v2864_v46 }
 0x8f0   :  { %v968_v47 = vsel %vm233_vm1, %v964_v35, 0.0 }
 0x8f1   :  { %969 = vadd.xlane.f32.xlu1 %v968_v47 }
 0x958   :  { %v967_v55 = vpop.xlane.xlu2 %966 }
 0x959   :  { %v971_v58 = vmul.f32 %v967_v55, %v2610_v43 }
 0x95b   :  { %v973_v59 = vadd.f32 1e-05, %v971_v58 }
 0x95d   :  { %2155 = vrsqrt.f32 %v973_v59  ;;  %vm981_vm12 = vweird.f32 %v973_v59 }
 0x963   :  { %v2156_v0 = vpop.eup %2155 }
 0x964   :  { %v976_v2 = vmul.f32 %v2156_v0, %v973_v59  ;;  %v970_v4 = vpop.xlane.xlu1 %969  ;;  %vm982_vm11 = vweird.f32 %v2156_v0 }
 0x965   :  { %v972_v6 = vmul.f32 %v970_v4, %v2610_v43  ;;  %vm983_vm13 = vmor %vm981_vm12, %vm982_vm11  ;;  %v1984_v4 = vld [vmem:[%s3247_s10 + $0xd8] sm:$0xff] }
 0x966   :  { %v977_v5 = vmul.f32 %v2156_v0, %v976_v2  ;;  %v1986_v2 = vld [vmem:[%s3247_s10 + $0xe8] sm:$0xff] }
 0x967   :  { %v974_v9 = vadd.f32 1e-05, %v972_v6  ;;  %1191 = vmatpush.msra.mxu3 %v1986_v2  ;;  %v1982_v6 = vld [vmem:[%s3247_s10 + $0xc8] sm:$0xff] }
 0x968   :  { %v978_v8 = vmul.f32 0.5, %v977_v5  ;;  %v1981_v5 = vld [vmem:[%s3247_s10 + $0xc0] sm:$0xff] }
 0x969   :  { %2157 = vrsqrt.f32 %v974_v9  ;;  %vm991_vm15 = vweird.f32 %v974_v9  ;;  %1192 = vmatpush.msra.mxu3 %v1984_v4 }
 0x96a   :  { %v979_v13 = vsub.f32 1.5, %v978_v8  ;;  %v1980_v8 = vld [vmem:[%s3247_s10 + $0xb8] sm:$0xff] }
 0x96b   :  { %1193 = vmatpush.msra.mxu3 %v1982_v6 }
 0x96c   :  { %v980_v16 = vmul.f32 %v2156_v0, %v979_v13  ;;  %v1975_v13 = vld [vmem:[%s3247_s10 + $0x90] sm:$0xff] }
 0x96d   :  { %1194 = vmatpush.msra.mxu3 %v1980_v8 }
 0x96e   :  { %v984_v18 = vsel %vm983_vm13, %v2156_v0, %v980_v16  ;;  %v1985_v0 = vld [vmem:[%s3247_s10 + $0xe0] sm:$0xff] }
 0x96f   :  { %v995_v20 = vmul.f32 %v984_v18, %v961_v40  ;;  %v2158_v21 = vpop.eup %2157  ;;  %1168 = vmatpush.msra.mxu2 %v1985_v0  ;;  %1195 = vmatpush.msra.mxu3 %v1978_v10  ;;  %v1973_v16 = vld [vmem:[%s3247_s10 + $0x80] sm:$0xff] }
 0x970   :  { %v986_v23 = vmul.f32 %v2158_v21, %v974_v9  ;;  %vm992_vm14 = vweird.f32 %v2158_v21  ;;  %v1977_v9 = vld [vmem:[%s3247_s10 + $0xa0] sm:$0xff] }
 0x971   :  { %1971 = vmatmul.msk.f32.vlgmr.msrb.gmra.mxu0 %vm233_vm1, %v995_v20  ;;  %vm993_vm2 = vmor %vm991_vm15, %vm992_vm14  ;;  %1169 = vmatpush.msra.mxu2 %v1983_v3 }
 0x972   :  { %v987_v25 = vmul.f32 %v2158_v21, %v986_v23  ;;  %1196 = vmatpush.msra.mxu3 %v1976_v14 }
 0x973   :  { %1170 = vmatpush.msra.mxu2 %v1981_v5 }
 0x974   :  { %v988_v27 = vmul.f32 0.5, %v987_v25  ;;  %1197 = vmatpush.msra.mxu3 %v1974_v17 }
 0x975   :  { %1171 = vmatpush.msra.mxu2 %v1979_v7 }
 0x976   :  { %v989_v29 = vsub.f32 1.5, %v988_v27 }
 0x977   :  { %1172 = vmatpush.msra.mxu2 %v1977_v9 }
 0x978   :  { %v990_v30 = vmul.f32 %v2158_v21, %v989_v29 }
 0x979   :  { %1173 = vmatpush.msra.mxu2 %v1975_v13 }
 0x97a   :  { %v994_v33 = vsel %vm993_vm2, %v2158_v21, %v990_v30 }
 0x97b   :  { %v996_v34 = vmul.f32 %v994_v33, %v2864_v46  ;;  %1174 = vmatpush.msra.mxu2 %v1973_v16 }
 0x97d   :  { %1972 = vmatmul.msk.f32.gmra.mxu0 %vm233_vm1, %v996_v34 }
 0x9ee   :  { %v1032_v12 = vpop.f32.mrf.mxu0 }
 0x9ef   :  { %v1033_v28 = vadd.f32 %v2112_v11, %v1032_v12 }
 0x9f1   :  { %v1038_v40 = vmax.f32 %v1033_v28, 0.0 }
 0x9f3   :  { %1076 = vmatmul.f32.vlgmr.msra.gmra.mxu1 %v1038_v40 }
 0x9fa   :  { %v1035_v42 = vpop.f32.mrf.mxu0 }
 0x9fb   :  { %v1036_v44 = vadd.f32 %v2112_v11, %v1035_v42 }
 0x9fd   :  { %v1039_v45 = vmax.f32 %v1036_v44, 0.0  ;;  %v1989_v44 = vld [vmem:[%s3248_s11 + $0x2] sm:$0x3] }
 0x9ff   :  { %1079 = vmatmul.f32.gmra.mxu1 %v1039_v45  ;;  %v1149_v45 = vperm.slane %v1989_v44, 0 }
 0xa70   :  { %v1077_v46 = vpop.f32.mrf.mxu1 }
 0xa71   :  { %v1078_v35 = vadd.f32 %v2113_v15, %v1077_v46 }
 0xa73   :  { %v2929_v47 = vadd.f32 %v1078_v35, %v2849_v31 }
 0xa75   :  { %v1085_v48 = vsel %vm233_vm1, %v2929_v47, 0.0 }
 0xa76   :  { %1086 = vadd.xlane.f32.xlu2 %v1085_v48  ;;  %v1150_v48 = vperm.slane %v1989_v44, 1  ;;  %v1996_v44 = vld [vmem:[%s3249_s12 + $0x50] sm:$0xff] }
 0xa7c   :  { %v1080_v51 = vpop.f32.mrf.mxu1 }
 0xa7d   :  { %v1081_v52 = vadd.f32 %v2113_v15, %v1080_v51 }
 0xa7f   :  { %v2934_v53 = vadd.f32 %v1081_v52, %v2855_v1 }
 0xa81   :  { %v1088_v54 = vsel %vm233_vm1, %v2934_v53, 0.0 }
 0xa82   :  { %1089 = vadd.xlane.f32.xlu2 %v1088_v54 }
 0xae9   :  { %v1087_v32 = vpop.xlane.xlu2 %1086 }
 0xaea   :  { %v1091_v36 = vmul.f32 %v1087_v32, %v2610_v43 }
 0xaec   :  { %v1093_v41 = vsub.f32 %v2929_v47, %v1091_v36 }
 0xaee   :  { %v1095_v31 = vmul.f32 %v1093_v41, %v1093_v41 }
 0xaf0   :  { %v1097_v55 = vsel %vm233_vm1, %v1095_v31, 0.0 }
 0xaf1   :  { %1098 = vadd.xlane.f32.xlu2 %v1097_v55 }
 0xaf5   :  { %v1090_v58 = vpop.xlane.xlu2 %1089 }
 0xaf6   :  { %v1092_v59 = vmul.f32 %v1090_v58, %v2610_v43 }
 0xaf8   :  { %v2943_v60 = vsub.f32 %v2934_v53, %v1092_v59 }
 0xafa   :  { %v1096_v1 = vmul.f32 %v2943_v60, %v2943_v60 }
 0xafc   :  { %v1100_v61 = vsel %vm233_vm1, %v1096_v1, 0.0 }
 0xafd   :  { %1101 = vadd.xlane.f32.xlu2 %v1100_v61 }
 0xb64   :  { %v1099_v18 = vpop.xlane.xlu2 %1098 }
 0xb65   :  { %v1103_v19 = vmul.f32 %v1099_v18, %v2610_v43 }
 0xb67   :  { %v1105_v20 = vadd.f32 1e-05, %v1103_v19 }
 0xb69   :  { %2159 = vrsqrt.f32 %v1105_v20  ;;  %vm1113_vm4 = vweird.f32 %v1105_v20 }
 0xb6f   :  { %v2160_v21 = vpop.eup %2159 }
 0xb70   :  { %v1108_v22 = vmul.f32 %v2160_v21, %v1105_v20  ;;  %v1102_v23 = vpop.xlane.xlu2 %1101  ;;  %vm1114_vm3 = vweird.f32 %v2160_v21 }
 0xb71   :  { %v1104_v25 = vmul.f32 %v1102_v23, %v2610_v43  ;;  %vm1115_vm5 = vmor %vm1113_vm4, %vm1114_vm3 }
 0xb72   :  { %v1109_v24 = vmul.f32 %v2160_v21, %v1108_v22 }
 0xb73   :  { %v1106_v27 = vadd.f32 1e-05, %v1104_v25 }
 0xb74   :  { %v1110_v26 = vmul.f32 0.5, %v1109_v24 }
 0xb75   :  { %2161 = vrsqrt.f32 %v1106_v27  ;;  %vm1123_vm7 = vweird.f32 %v1106_v27 }
 0xb76   :  { %v1111_v29 = vsub.f32 1.5, %v1110_v26 }
 0xb78   :  { %v1112_v30 = vmul.f32 %v2160_v21, %v1111_v29 }
 0xb7a   :  { %v1116_v33 = vsel %vm1115_vm5, %v2160_v21, %v1112_v30 }
 0xb7b   :  { %v1127_v34 = vmul.f32 %v1116_v33, %v1093_v41  ;;  %v2162_v37 = vpop.eup %2161 }
 0xb7c   :  { %v1118_v38 = vmul.f32 %v2162_v37, %v1106_v27  ;;  %vm1124_vm6 = vweird.f32 %v2162_v37 }
 0xb7d   :  { %1990 = vmatmul.msk.f32.vlgmr.msra.gmra.mxu2 %vm233_vm1, %v1127_v34  ;;  %1992 = vmatmul.msk.f32.vlgmr.msra.gmra.mxu3 %vm233_vm1, %v1127_v34  ;;  %vm1125_vm8 = vmor %vm1123_vm7, %vm1124_vm6 }
 0xb7e   :  { %v1119_v39 = vmul.f32 %v2162_v37, %v1118_v38 }
 0xb80   :  { %v1120_v11 = vmul.f32 0.5, %v1119_v39 }
 0xb82   :  { %v1121_v12 = vsub.f32 1.5, %v1120_v11 }
 0xb84   :  { %v1122_v28 = vmul.f32 %v2162_v37, %v1121_v12 }
 0xb86   :  { %v1126_v40 = vsel %vm1125_vm8, %v2162_v37, %v1122_v28 }
 0xb87   :  { %v1128_v42 = vmul.f32 %v1126_v40, %v2943_v60 }
 0xb89   :  { %1991 = vmatmul.msk.f32.gmra.mxu2 %vm233_vm1, %v1128_v42  ;;  %1993 = vmatmul.msk.f32.gmra.mxu3 %vm233_vm1, %v1128_v42  ;;  %v1997_v42 = vld [vmem:[%s3249_s12 + $0x58] sm:$0xff] }
 0xc00   :  { %v1176_v15 = vpop.f32.mrf.mxu2  ;;  %v1199_v35 = vpop.f32.mrf.mxu3 }
 0xc01   :  { %v3006_v46 = vadd.f32 %v1176_v15, %v1149_v45  ;;  %v1200_v54 = vadd.f32 %v1199_v35, %v1150_v48 }
 0xc03   :  { %1222 = vrot.lane.b32.xlu2 %v3006_v46, %s2441_s9 }
 0xc0c   :  { %v1179_v51 = vpop.f32.mrf.mxu2  ;;  %v1202_v52 = vpop.f32.mrf.mxu3 }
 0xc0d   :  { %v3010_v32 = vadd.f32 %v1179_v51, %v1149_v45  ;;  %v1203_v36 = vadd.f32 %v1202_v52, %v1150_v48  ;;  %v1994_v51 = vld [vmem:[%s3249_s12 + $0x40] sm:$0xff] }
 0xc0f   :  { %1305 = vmatpush.msrb.mxu2 %v1203_v36  ;;  %1347 = vrot.lane.b32.xlu2 %v3010_v32, %s2443_s2  ;;  %v3014_v41 = vpack.i.bf16 %v1200_v54, %v1203_v36 }
 0xc10   :  { %1351 = vrot.lane.b32.xlu1 %v3010_v32, %s2442_s14  ;;  %1224 = vrot.lane.b32.xlu0 %v3010_v32, %s2441_s9 }
 0xc11   :  { %1306 = vmatpush.msrb.mxu2 %v1200_v54 }
 0xc13   :  { %1469 = vmatpush.msra.mxu2 %v1997_v42 }
 0xc15   :  { %1470 = vmatpush.msra.mxu2 %v1996_v44 }
 0xc18   :  { %1349 = vrot.lane.b32.xlu0 %v3006_v46, %s2442_s14  ;;  %s2448_s14 = smov [#allocation16]  }
 0xc20   :  { %1345 = vrot.lane.b32.xlu0 %v3006_v46, %s2443_s2 }
 0xc5d   :  { %v1223_v55 = vpop.permute.xlu2 %1222 }
 0xc69   :  { %v1348_v1 = vpop.permute.xlu2 %1347 }
 0xc82   :  { %v1225_v31 = vpop.permute.xlu0 %1224  ;;  %v1352_v58 = vpop.permute.xlu1 %1351 }
 0xc83   :  { %2003 = vmatpush.xpose.msk.msra.mxu0 %vm189_vm0, %v1225_v31 }
 0xc87   :  { %2004 = vmatpush.xpose.msk.msra.mxu0 %vm189_vm0, %v1223_v55 }
 0xc8a   :  { %v1350_v59 = vpop.permute.xlu0 %1349  ;;  %2005 = vmatmul.msk.f32.vlgmr.msra.gmra.mxu0 %vm189_vm0, %v3006_v46 }
 0xc8b   :  { %2011 = vmatpush.xpose.msk.msrb.mxu0 %vm189_vm0, %v1352_v58 }
 0xc8f   :  { %2012 = vmatpush.xpose.msk.msrb.mxu0 %vm189_vm0, %v1350_v59 }
 0xc92   :  { %2006 = vmatmul.msk.f32.gmra.mxu0 %vm189_vm0, %v3010_v32  ;;  %v1346_v60 = vpop.permute.xlu0 %1345 }
 0xc9a   :  { %2013 = vmatmul.msk.f32.vlgmr.msrb.gmra.mxu0 %vm189_vm0, %v1346_v60 }
 0xca2   :  { %2014 = vmatmul.msk.f32.gmra.mxu0 %vm189_vm0, %v1348_v1 }
 0xd07   :  { %v1251_v61 = vpop.f32.mrf.mxu0 }
 0xd08   :  { %v1257_v62 = vmul.f32 0.25, %v1251_v61 }
 0xd0a   :  { %v1259_v63 = vadd.f32 %v1257_v62, %v2715_v50 }
 0xd0c   :  { %v1261_v0 = vsel %vm285_vm9, %v1259_v63, -1e+30 }
 0xd0d   :  { %v1263_v2 = vsel %vm189_vm0, %v1261_v0, -inf }
 0xd0e   :  { %1264 = vmax.xlane.f32.xlu0 %v1263_v2 }
 0xd0f   :  { %v1254_v3 = vpop.f32.mrf.mxu0 }
 0xd10   :  { %v1258_v4 = vmul.f32 0.25, %v1254_v3 }
 0xd12   :  { %v1260_v5 = vadd.f32 %v1258_v4, %v2724_v57 }
 0xd14   :  { %v1262_v6 = vsel %vm286_vm10, %v1260_v5, -1e+30 }
 0xd15   :  { %v1266_v7 = vsel %vm189_vm0, %v1262_v6, -inf }
 0xd16   :  { %1267 = vmax.xlane.f32.xlu2 %v1266_v7 }
 0xd17   :  { %v1378_v8 = vpop.f32.mrf.mxu0 }
 0xd18   :  { %v1384_v9 = vmul.f32 0.25, %v1378_v8 }
 0xd1a   :  { %v1386_v10 = vadd.f32 %v1384_v9, %v2715_v50 }
 0xd1c   :  { %v1388_v13 = vsel %vm285_vm9, %v1386_v10, -1e+30 }
 0xd1d   :  { %v1390_v14 = vsel %vm189_vm0, %v1388_v13, -inf }
 0xd1e   :  { %1391 = vmax.xlane.f32.xlu1 %v1390_v14  ;;  %v2114_v14 = vld [vmem:[%s3250_s13 + $0x1] ss:$0 sm:$0xff] }
 0xd1f   :  { %v1381_v16 = vpop.f32.mrf.mxu0 }
 0xd20   :  { %v1385_v17 = vmul.f32 0.25, %v1381_v16 }
 0xd22   :  { %v1387_v18 = vadd.f32 %v1385_v17, %v2724_v57 }
 0xd24   :  { %v1389_v19 = vsel %vm286_vm10, %v1387_v18, -1e+30 }
 0xd25   :  { %v1393_v20 = vsel %vm189_vm0, %v1389_v19, -inf }
 0xd26   :  { %1394 = vmax.xlane.f32.xlu2 %v1393_v20 }
 0xd81   :  { %v1265_v21 = vpop.xlane.xlu0 %1264 }
 0xd82   :  { %v1269_v22 = vsub.f32 %v1261_v0, %v1265_v21 }
 0xd84   :  { %v1271_v23 = vmul.f32 1.442695, %v1269_v22 }
 0xd86   :  { %2163 = vpow2.f32 %v1271_v23 }
 0xd89   :  { %v1268_v50 = vpop.xlane.xlu2 %1267 }
 0xd8a   :  { %v1270_v24 = vsub.f32 %v1262_v6, %v1268_v50  ;;  %v2199_v50 = vld [vmem:[#allocation5] sm:$0xff] }
 0xd8c   :  { %v2164_v25 = vpop.eup %2163  ;;  %v1273_v26 = vmul.f32 1.442695, %v1270_v24 }
 0xd8d   :  { %v1275_v27 = vsel %vm189_vm0, %v2164_v25, 0.0 }
 0xd8e   :  { %2165 = vpow2.f32 %v1273_v26  ;;  %1276 = vadd.xlane.f32.xlu0 %v1275_v27 }
 0xd91   :  { %v1392_v29 = vpop.xlane.xlu1 %1391 }
 0xd92   :  { %v1396_v57 = vsub.f32 %v1388_v13, %v1392_v29 }
 0xd94   :  { %v2166_v30 = vpop.eup %2165  ;;  %v1398_v33 = vmul.f32 1.442695, %v1396_v57 }
 0xd95   :  { %v1278_v34 = vsel %vm189_vm0, %v2166_v30, 0.0 }
 0xd96   :  { %2167 = vpow2.f32 %v1398_v33  ;;  %1279 = vadd.xlane.f32.xlu2 %v1278_v34 }
 0xd99   :  { %v1395_v37 = vpop.xlane.xlu2 %1394 }
 0xd9a   :  { %v1397_v38 = vsub.f32 %v1389_v19, %v1395_v37 }
 0xd9c   :  { %v2168_v39 = vpop.eup %2167  ;;  %v1400_v11 = vmul.f32 1.442695, %v1397_v38 }
 0xd9d   :  { %v1402_v12 = vsel %vm189_vm0, %v2168_v39, 0.0 }
 0xd9e   :  { %2169 = vpow2.f32 %v1400_v11  ;;  %1403 = vadd.xlane.f32.xlu1 %v1402_v12 }
 0xda2   :  { %2095 = vrot.lane.b32.xlu0 %v3014_v41, %s2443_s2  ;;  %s1915_s2 = sshll.u32 %s2448_s14, 4  ;;  %s1916_s2 = int_to_ptr.vmem [resolvable:$true] %s1915_s2 }
 0xda4   :  { %v2170_v28 = vpop.eup %2169 }
 0xda5   :  { %v1405_v40 = vsel %vm189_vm0, %v2170_v28, 0.0 }
 0xda6   :  { %1406 = vadd.xlane.f32.xlu1 %v1405_v40 }
 0xdaa   :  { %1617 = vrot.lane.b32.xlu0 %v3006_v46, %s2445_s22 }
 0xdae   :  { %1619 = vrot.lane.b32.xlu2 %v3010_v32, %s2445_s22 }
 0xdb2   :  { %1613 = vrot.lane.b32.xlu0 %v3006_v46, %s2446_s20 }
 0xdb6   :  { %1484 = vrot.lane.b32.xlu2 %v3006_v46, %s2444_s21 }
 0xdba   :  { %1615 = vrot.lane.b32.xlu0 %v3010_v32, %s2446_s20 }
 0xdbe   :  { %1482 = vrot.lane.b32.xlu2 %v3010_v32, %s2447_s23 }
 0xdbf   :  { %1486 = vrot.lane.b32.xlu1 %v3010_v32, %s2444_s21 }
 0xdc7   :  { %1480 = vrot.lane.b32.xlu1 %v3006_v46, %s2447_s23  ;;  %v1995_v46 = vld [vmem:[%s3249_s12 + $0x48] sm:$0xff] }
 0xdc8   :  { %1334 = vmatpush.msrb.mxu3 %v1995_v46 }
 0xdca   :  { %1335 = vmatpush.msrb.mxu3 %v1994_v51 }
 0xe01   :  { %v1277_v45 = vpop.xlane.xlu0 %1276 }
 0xe02   :  { %2171 = vrcp.f32 %v1277_v45 }
 0xe08   :  { %v2172_v15 = vpop.eup %2171 }
 0xe09   :  { %v1283_v35 = vmul.f32 %v2172_v15, %v2164_v25  ;;  %v1280_v48 = vpop.xlane.xlu2 %1279 }
 0xe0a   :  { %2173 = vrcp.f32 %v1280_v48 }
 0xe0b   :  { %2007 = vmatmul.msk.f32.vlgmr.msrb.gmra.mxu2 %vm189_vm0, %v1283_v35 }
 0xe10   :  { %v2174_v52 = vpop.eup %2173 }
 0xe11   :  { %v1404_v54 = vpop.xlane.xlu1 %1403  ;;  %v1620_v32 = vpop.permute.xlu2 %1619  ;;  %v1284_v36 = vmul.f32 %v2174_v52, %v2166_v30 }
 0xe12   :  { %2175 = vrcp.f32 %v1404_v54  ;;  %2027 = vmatpush.xpose.msk.msrb.mxu2 %vm189_vm0, %v1620_v32 }
 0xe13   :  { %2008 = vmatmul.msk.f32.gmra.mxu2 %vm189_vm0, %v1284_v36 }
 0xe14   :  { %v2096_v31 = vpop.permute.xlu0 %2095 }
 0xe15   :  { %v2097_v55 = vunpack.i.l.bf16 %v2096_v31  ;;  %v2098_v58 = vunpack.i.h.bf16 %v2096_v31 }
 0xe17   :  { %1440 = vmatpush.msrb.mxu1 %v2097_v55 }
 0xe18   :  { %v2176_v59 = vpop.eup %2175 }
 0xe19   :  { %v1410_v60 = vmul.f32 %v2176_v59, %v2168_v39  ;;  %1441 = vmatpush.msrb.mxu1 %v2098_v58  ;;  %v1407_v1 = vpop.xlane.xlu1 %1406  ;;  %v1485_v2 = vpop.permute.xlu2 %1484  ;;  %v2200_v39 = vld [vmem:[#allocation5 + $0x8] sm:$0xff] }
 0xe1a   :  { %2177 = vrcp.f32 %v1407_v1 }
 0xe1b   :  { %2015 = vmatmul.msk.f32.vlgmr.msrb.gmra.mxu1 %vm189_vm0, %v1410_v60 }
 0xe1c   :  { %v1618_v61 = vpop.permute.xlu0 %1617 }
 0xe1d   :  { %2028 = vmatpush.xpose.msk.msrb.mxu2 %vm189_vm0, %v1618_v61 }
 0xe20   :  { %v2178_v62 = vpop.eup %2177 }
 0xe21   :  { %v1411_v63 = vmul.f32 %v2178_v62, %v2170_v28  ;;  %v1483_v8 = vpop.permute.xlu2 %1482 }
 0xe23   :  { %2016 = vmatmul.msk.f32.gmra.mxu1 %vm189_vm0, %v1411_v63 }
 0xe24   :  { %v1614_v9 = vpop.permute.xlu0 %1613 }
 0xe2c   :  { %v1616_v10 = vpop.permute.xlu0 %1615 }
 0xe31   :  { %v1487_v0 = vpop.permute.xlu1 %1486 }
 0xe32   :  { %2019 = vmatpush.xpose.msk.msra.mxu3 %vm189_vm0, %v1487_v0 }
 0xe36   :  { %2020 = vmatpush.xpose.msk.msra.mxu3 %vm189_vm0, %v1485_v2 }
 0xe39   :  { %v1481_v6 = vpop.permute.xlu1 %1480 }
 0xe8e   :  { %v1308_v3 = vpop.f32.mrf.mxu2 }
 0xe8f   :  { %2009 = vmatmul.msk.f32.vlgmr.msrb.gmra.mxu3 %vm189_vm0, %v1308_v3 }
 0xe96   :  { %v1311_v4 = vpop.f32.mrf.mxu2 }
 0xe97   :  { %2010 = vmatmul.msk.f32.gmra.mxu3 %vm189_vm0, %v1311_v4 }
 0xe98   :  { %v1443_v5 = vpop.f32.mrf.mxu1 }
 0xe99   :  { %2017 = vmatmul.msk.f32.vlgmr.msra.gmra.mxu2 %vm189_vm0, %v1443_v5 }
 0xe9f   :  { %2021 = vmatmul.msk.f32.vlgmr.msra.gmra.mxu3 %vm189_vm0, %v1481_v6  ;;  %v1999_v6 = vld [vmem:[%s3249_s12 + $0x68] sm:$0xff] }
 0xea0   :  { %v1446_v7 = vpop.f32.mrf.mxu1  ;;  %1602 = vmatpush.msra.mxu1 %v1999_v6 }
 0xea1   :  { %2018 = vmatmul.msk.f32.gmra.mxu2 %vm189_vm0, %v1446_v7 }
 0xea7   :  { %2022 = vmatmul.msk.f32.gmra.mxu3 %vm189_vm0, %v1483_v8 }
 0xea9   :  { %2029 = vmatmul.msk.f32.vlgmr.msrb.gmra.mxu2 %vm189_vm0, %v1614_v9 }
 0xeb1   :  { %2030 = vmatmul.msk.f32.gmra.mxu2 %vm189_vm0, %v1616_v10 }
 0xf12   :  { %v1337_v13 = vpop.f32.mrf.mxu3 }
 0xf13   :  { %v1343_v17 = vadd.f32 %v2114_v14, %v1337_v13 }
 0xf1a   :  { %v1340_v16 = vpop.f32.mrf.mxu3 }
 0xf1b   :  { %v1344_v21 = vadd.f32 %v2114_v14, %v1340_v16 }
 0xf1c   :  { %v1472_v18 = vpop.f32.mrf.mxu2 }
 0xf1d   :  { %v3103_v19 = vadd.f32 %v1472_v18, %v1343_v17 }
 0xf22   :  { %v1513_v20 = vpop.f32.mrf.mxu3 }
 0xf23   :  { %v1519_v22 = vmul.f32 0.25, %v1513_v20 }
 0xf24   :  { %v1475_v23 = vpop.f32.mrf.mxu2 }
 0xf25   :  { %v1521_v24 = vadd.f32 %v2199_v50, %v1519_v22  ;;  %v3105_v25 = vadd.f32 %v1475_v23, %v1344_v21 }
 0xf27   :  { %v1523_v26 = vsel %vm285_vm9, %v1521_v24, -1e+30  ;;  %v2001_v24 = vld [vmem:[%s3249_s12 + $0x78] sm:$0xff] }
 0xf28   :  { %v1525_v27 = vsel %vm189_vm0, %v1523_v26, -inf }
 0xf29   :  { %1526 = vmax.xlane.f32.xlu0 %v1525_v27 }
 0xf2a   :  { %v1516_v29 = vpop.f32.mrf.mxu3 }
 0xf2b   :  { %v1520_v33 = vmul.f32 0.25, %v1516_v29 }
 0xf2c   :  { %v1646_v57 = vpop.f32.mrf.mxu2 }
 0xf2d   :  { %v1652_v30 = vmul.f32 0.25, %v1646_v57  ;;  %v1522_v11 = vadd.f32 %v2200_v39, %v1520_v33 }
 0xf2f   :  { %v1654_v34 = vadd.f32 %v2199_v50, %v1652_v30  ;;  %v1524_v42 = vsel %vm286_vm10, %v1522_v11, -1e+30  ;;  %v1998_v50 = vld [vmem:[%s3249_s12 + $0x60] sm:$0xff] }
 0xf30   :  { %v1528_v15 = vsel %vm189_vm0, %v1524_v42, -inf  ;;  %1603 = vmatpush.msra.mxu1 %v1998_v50  ;;  %v2042_v50 = vld [vmem:[%s3253_s16 + $0xa0] sm:$0xff] }
 0xf31   :  { %v1656_v37 = vsel %vm285_vm9, %v1654_v34, -1e+30 }
 0xf32   :  { %v1658_v38 = vsel %vm189_vm0, %v1656_v37, -inf }
 0xf33   :  { %1659 = vmax.xlane.f32.xlu1 %v1658_v38 }
 0xf34   :  { %v1649_v12 = vpop.f32.mrf.mxu2 }
 0xf35   :  { %v1653_v28 = vmul.f32 0.25, %v1649_v12 }
 0xf37   :  { %v1655_v40 = vadd.f32 %v2200_v39, %v1653_v28 }
 0xf39   :  { %v1657_v44 = vsel %vm286_vm10, %v1655_v40, -1e+30 }
 0xf3a   :  { %v1661_v45 = vsel %vm189_vm0, %v1657_v44, -inf }
 0xf3b   :  { %1662 = vmax.xlane.f32.xlu2 %v1661_v45  ;;  %1529 = vmax.xlane.f32.xlu1 %v1528_v15 }
 0xf54   :  { %2100 = vrot.lane.b32.xlu1 %v3014_v41, %s2446_s20 }
 0xf9c   :  { %v1527_v49 = vpop.xlane.xlu0 %1526 }
 0xf9d   :  { %v1531_v35 = vsub.f32 %v1523_v26, %v1527_v49  ;;  %v2000_v26 = vld [vmem:[%s3249_s12 + $0x70] sm:$0xff] }
 0xf9f   :  { %v1533_v48 = vmul.f32 1.442695, %v1531_v35 }
 0xfa1   :  { %2179 = vpow2.f32 %v1533_v48 }
 0xfa6   :  { %v1660_v46 = vpop.xlane.xlu1 %1659 }
 0xfa7   :  { %v2180_v51 = vpop.eup %2179  ;;  %v1664_v52 = vsub.f32 %v1656_v37, %v1660_v46 }
 0xfa8   :  { %v1537_v54 = vsel %vm189_vm0, %v2180_v51, 0.0 }
 0xfa9   :  { %v1666_v56 = vmul.f32 1.442695, %v1664_v52  ;;  %1538 = vadd.xlane.f32.xlu2 %v1537_v54  ;;  %v1800_v52 = vld [vmem:[#allocation14 + $0x78] sm:$0xff]  ;;  %v1799_v54 = vld [vmem:[#allocation14 + $0x70] sm:$0xff] }
 0xfaa   :  { %1820 = vmatpush.msrb.mxu1 %v1800_v52 }
 0xfab   :  { %2181 = vpow2.f32 %v1666_v56  ;;  %v1798_v56 = vld [vmem:[#allocation14 + $0x68] sm:$0xff] }
 0xfac   :  { %1821 = vmatpush.msrb.mxu1 %v1799_v54 }
 0xfae   :  { %v1663_v32 = vpop.xlane.xlu2 %1662  ;;  %v1530_v36 = vpop.xlane.xlu1 %1529  ;;  %1822 = vmatpush.msrb.mxu1 %v1798_v56 }
 0xfaf   :  { %v1665_v31 = vsub.f32 %v1657_v44, %v1663_v32  ;;  %v1532_v59 = vsub.f32 %v1524_v42, %v1530_v36  ;;  %v1797_v32 = vld [vmem:[#allocation14 + $0x60] sm:$0xff]  ;;  %v1796_v36 = vld [vmem:[#allocation14 + $0x58] sm:$0xff] }
 0xfb0   :  { %1823 = vmatpush.msrb.mxu1 %v1797_v32 }
 0xfb1   :  { %v2182_v55 = vpop.eup %2181  ;;  %v1668_v58 = vmul.f32 1.442695, %v1665_v31  ;;  %v1535_v1 = vmul.f32 1.442695, %v1532_v59  ;;  %v1795_v31 = vld [vmem:[#allocation14 + $0x50] sm:$0xff] }
 0xfb2   :  { %v1670_v60 = vsel %vm189_vm0, %v2182_v55, 0.0  ;;  %1824 = vmatpush.msrb.mxu1 %v1796_v36 }
 0xfb3   :  { %1671 = vadd.xlane.f32.xlu0 %v1670_v60  ;;  %2183 = vpow2.f32 %v1668_v58  ;;  %v1793_v58 = vld [vmem:[#allocation14 + $0x40] sm:$0xff] }
 0xfb4   :  { %2185 = vpow2.f32 %v1535_v1  ;;  %1825 = vmatpush.msrb.mxu1 %v1795_v31 }
 0xfb9   :  { %v2184_v61 = vpop.eup %2183 }
 0xfba   :  { %v1673_v62 = vsel %vm189_vm0, %v2184_v61, 0.0  ;;  %v2186_v63 = vpop.eup %2185 }
 0xfbb   :  { %1674 = vadd.xlane.f32.xlu0 %v1673_v62  ;;  %v1540_v0 = vsel %vm189_vm0, %v2186_v63, 0.0  ;;  %v2052_v62 = vld [vmem:[%s3253_s16 + $0xf0] sm:$0xff] }
 0xfc1   :  { %2105 = vrot.lane.b32.xlu2 %v3014_v41, %s2447_s23 }
 0xfc3   :  { %1541 = vadd.xlane.f32.xlu0 %v1540_v0  ;;  %v2050_v0 = vld [vmem:[%s3253_s16 + $0xe0] sm:$0xff] }
 0xfc6   :  { %v2101_v2 = vpop.permute.xlu1 %2100 }
 0xfc7   :  { %v2102_v3 = vunpack.i.l.bf16 %v2101_v2  ;;  %v2103_v4 = vunpack.i.h.bf16 %v2101_v2 }
 0xfc9   :  { %1706 = vmatpush.msrb.mxu3 %v2102_v3 }
 0xfcb   :  { %1707 = vmatpush.msrb.mxu3 %v2103_v4  ;;  %v2049_v4 = vld [vmem:[%s3253_s16 + $0xd8] sm:$0xff] }
0x101c   :  { %v1539_v5 = vpop.xlane.xlu2 %1538 }
0x101d   :  { %2187 = vrcp.f32 %v1539_v5 }
0x1023   :  { %v2188_v8 = vpop.eup %2187 }
0x1024   :  { %v2106_v7 = vpop.permute.xlu2 %2105  ;;  %v1545_v13 = vmul.f32 %v2188_v8, %v2180_v51  ;;  %v2048_v8 = vld [vmem:[%s3253_s16 + $0xd0] sm:$0xff] }
0x1025   :  { %v2107_v9 = vunpack.i.l.bf16 %v2106_v7  ;;  %v2108_v41 = vunpack.i.h.bf16 %v2106_v7 }
0x1026   :  { %v1672_v10 = vpop.xlane.xlu0 %1671 }
0x1027   :  { %2189 = vrcp.f32 %v1672_v10  ;;  %1573 = vmatpush.msra.mxu0 %v2107_v9 }
0x1029   :  { %1574 = vmatpush.msra.mxu0 %v2108_v41  ;;  %v2047_v41 = vld [vmem:[%s3253_s16 + $0xc8] sm:$0xff] }
0x102a   :  { %2023 = vmatmul.msk.f32.vlgmr.msra.gmra.mxu0 %vm189_vm0, %v1545_v13 }
0x102b   :  { %1735 = vmatpush.msrb.mxu0 %v2001_v24 }
0x102d   :  { %v2190_v14 = vpop.eup %2189  ;;  %1736 = vmatpush.msrb.mxu0 %v2000_v26  ;;  %v2041_v26 = vld [vmem:[%s3253_s16 + $0x98] sm:$0xff] }
0x102e   :  { %v1678_v16 = vmul.f32 %v2190_v14, %v2182_v55  ;;  %v1675_v17 = vpop.xlane.xlu0 %1674  ;;  %v1794_v55 = vld [vmem:[#allocation14 + $0x48] sm:$0xff]  ;;  %v2046_v14 = vld [vmem:[%s3253_s16 + $0xc0] sm:$0xff] }
0x102f   :  { %2191 = vrcp.f32 %v1675_v17  ;;  %1826 = vmatpush.msrb.mxu1 %v1794_v55 }
0x1030   :  { %2031 = vmatmul.msk.f32.vlgmr.msrb.gmra.mxu3 %vm189_vm0, %v1678_v16  ;;  %v2045_v16 = vld [vmem:[%s3253_s16 + $0xb8] sm:$0xff] }
0x1031   :  { %1827 = vmatpush.msrb.mxu1 %v1793_v58 }
0x1035   :  { %v2192_v18 = vpop.eup %2191 }
0x1036   :  { %v1542_v20 = vpop.xlane.xlu0 %1541  ;;  %v1679_v21 = vmul.f32 %v2192_v18, %v2184_v61  ;;  %v2053_v61 = vld [vmem:[%s3253_s16 + $0xf8] sm:$0xff]  ;;  %v2044_v18 = vld [vmem:[%s3253_s16 + $0xb0] sm:$0xff] }
0x1037   :  { %2193 = vrcp.f32 %v1542_v20  ;;  %1859 = vmatpush.msra.mxu2 %v2053_v61 }
0x1038   :  { %2032 = vmatmul.msk.f32.gmra.mxu3 %vm189_vm0, %v1679_v21 }
0x1039   :  { %1860 = vmatpush.msra.mxu2 %v2052_v62 }
0x103d   :  { %v2194_v22 = vpop.eup %2193 }
0x103e   :  { %v1546_v23 = vmul.f32 %v2194_v22, %v2186_v63  ;;  %v2051_v63 = vld [vmem:[%s3253_s16 + $0xe8] sm:$0xff] }
0x103f   :  { %1861 = vmatpush.msra.mxu2 %v2051_v63  ;;  %v2043_v22 = vld [vmem:[%s3253_s16 + $0xa8] sm:$0xff] }
0x1040   :  { %2024 = vmatmul.msk.f32.gmra.mxu0 %vm189_vm0, %v1546_v23 }
0x1041   :  { %1862 = vmatpush.msra.mxu2 %v2050_v0 }
0x1043   :  { %1863 = vmatpush.msra.mxu2 %v2049_v4 }
0x1045   :  { %1864 = vmatpush.msra.mxu2 %v2048_v8 }
0x1047   :  { %1865 = vmatpush.msra.mxu2 %v2047_v41 }
0x1049   :  { %1866 = vmatpush.msra.mxu2 %v2046_v14 }
0x104b   :  { %1867 = vmatpush.msra.mxu2 %v2045_v16 }
0x104d   :  { %1868 = vmatpush.msra.mxu2 %v2044_v18 }
0x104f   :  { %1869 = vmatpush.msra.mxu2 %v2043_v22 }
0x1051   :  { %1870 = vmatpush.msra.mxu2 %v2042_v50 }
0x1053   :  { %1871 = vmatpush.msra.mxu2 %v2041_v26 }
0x10a7   :  { %v1576_v27 = vpop.f32.mrf.mxu0 }
0x10a8   :  { %2025 = vmatmul.msk.f32.vlgmr.msra.gmra.mxu1 %vm189_vm0, %v1576_v27 }
0x10b3   :  { %v1709_v29 = vpop.f32.mrf.mxu3 }
0x10b4   :  { %2033 = vmatmul.msk.f32.vlgmr.msrb.gmra.mxu0 %vm189_vm0, %v1709_v29 }
0x10bb   :  { %v1712_v57 = vpop.f32.mrf.mxu3 }
0x10bc   :  { %2034 = vmatmul.msk.f32.gmra.mxu0 %vm189_vm0, %v1712_v57 }
0x10bd   :  { %v1579_v30 = vpop.f32.mrf.mxu0 }
0x10be   :  { %2026 = vmatmul.msk.f32.gmra.mxu1 %vm189_vm0, %v1579_v30 }
0x1125   :  { %v1605_v33 = vpop.f32.mrf.mxu1 }
0x1126   :  { %v1611_v34 = vadd.f32 %v1605_v33, %v3103_v19 }
0x1131   :  { %v1738_v37 = vpop.f32.mrf.mxu0 }
0x1132   :  { %v1744_v38 = vadd.f32 %v1738_v37, %v1611_v34  ;;  %v2040_v34 = vld [vmem:[%s3253_s16 + $0x90] sm:$0xff]  ;;  %v2039_v37 = vld [vmem:[%s3253_s16 + $0x88] sm:$0xff] }
0x1133   :  { %1872 = vmatpush.msra.mxu2 %v2040_v34 }
0x1134   :  { %v3149_v39 = vadd.f32 %v1744_v38, %v2929_v47  ;;  %v2038_v38 = vld [vmem:[%s3253_s16 + $0x80] sm:$0xff] }
0x1135   :  { %1873 = vmatpush.msra.mxu2 %v2039_v37 }
0x1136   :  { %v1748_v11 = vsel %vm233_vm1, %v3149_v39, 0.0 }
0x1137   :  { %1749 = vadd.xlane.f32.xlu0 %v1748_v11  ;;  %1874 = vmatpush.msra.mxu2 %v2038_v38  ;;  %v2115_v11 = vld [vmem:[%s3252_s15 + $0x1] ss:$0 sm:$0xff] }
0x1139   :  { %v1741_v40 = vpop.f32.mrf.mxu0 }
0x113b   :  { %v1608_v12 = vpop.f32.mrf.mxu1 }
0x113c   :  { %v1612_v28 = vadd.f32 %v1608_v12, %v3105_v25 }
0x113e   :  { %v1745_v42 = vadd.f32 %v1741_v40, %v1612_v28 }
0x1140   :  { %v3155_v44 = vadd.f32 %v1745_v42, %v2934_v53 }
0x1142   :  { %v1751_v19 = vsel %vm233_vm1, %v3155_v44, 0.0 }
0x1143   :  { %1752 = vadd.xlane.f32.xlu1 %v1751_v19 }
0x11aa   :  { %v1750_v45 = vpop.xlane.xlu0 %1749 }
0x11ab   :  { %v1754_v47 = vmul.f32 %v1750_v45, %v2610_v43 }
0x11ad   :  { %v1756_v15 = vsub.f32 %v3149_v39, %v1754_v47 }
0x11af   :  { %v1758_v49 = vmul.f32 %v1756_v15, %v1756_v15 }
0x11b1   :  { %v1760_v35 = vsel %vm233_vm1, %v1758_v49, 0.0 }
0x11b2   :  { %1761 = vadd.xlane.f32.xlu0 %v1760_v35 }
0x11b6   :  { %v1753_v48 = vpop.xlane.xlu1 %1752 }
0x11b7   :  { %v1755_v25 = vmul.f32 %v1753_v48, %v2610_v43 }
0x11b9   :  { %v3164_v46 = vsub.f32 %v3155_v44, %v1755_v25 }
0x11bb   :  { %v1759_v53 = vmul.f32 %v3164_v46, %v3164_v46 }
0x11bd   :  { %v1763_v51 = vsel %vm233_vm1, %v1759_v53, 0.0  ;;  %v1884_v53 = vld [vmem:[%s3242_s5] sm:$0x3] }
0x11be   :  { %1764 = vadd.xlane.f32.xlu2 %v1763_v51 }
0x1225   :  { %v1762_v59 = vpop.xlane.xlu0 %1761 }
0x1226   :  { %v1766_v60 = vmul.f32 %v1762_v59, %v2610_v43 }
0x1228   :  { %v1768_v1 = vadd.f32 1e-05, %v1766_v60 }
0x122a   :  { %2195 = vrsqrt.f32 %v1768_v1  ;;  %vm1776_vm10 = vweird.f32 %v1768_v1 }
0x1230   :  { %v2196_v2 = vpop.eup %2195 }
0x1231   :  { %v1771_v3 = vmul.f32 %v2196_v2, %v1768_v1  ;;  %v1765_v5 = vpop.xlane.xlu2 %1764  ;;  %vm1777_vm9 = vweird.f32 %v2196_v2 }
0x1232   :  { %v1767_v7 = vmul.f32 %v1765_v5, %v2610_v43  ;;  %vm1778_vm11 = vmor %vm1776_vm10, %vm1777_vm9 }
0x1233   :  { %v1772_v6 = vmul.f32 %v2196_v2, %v1771_v3 }
0x1234   :  { %v1769_v10 = vadd.f32 1e-05, %v1767_v7 }
0x1235   :  { %v1773_v9 = vmul.f32 0.5, %v1772_v6 }
0x1236   :  { %2197 = vrsqrt.f32 %v1769_v10  ;;  %vm1786_vm13 = vweird.f32 %v1769_v10 }
0x1237   :  { %v1774_v13 = vsub.f32 1.5, %v1773_v9 }
0x1239   :  { %v1775_v43 = vmul.f32 %v2196_v2, %v1774_v13 }
0x123b   :  { %v1779_v17 = vsel %vm1778_vm11, %v2196_v2, %v1775_v43 }
0x123c   :  { %v1790_v20 = vmul.f32 %v1779_v17, %v1756_v15  ;;  %v2198_v21 = vpop.eup %2197  ;;  %v2116_v15 = vld [vmem:[%s3254_s17 + $0x1] ss:$0 sm:$0xff]  ;;  %s1917_s17 = sshll.u32 %s3255_s18, 4  ;;  %s1918_s17 = int_to_ptr.hbm [resolvable:$true] %s1917_s17 }
0x123d   :  { %v1781_v23 = vmul.f32 %v2198_v21, %v1769_v10  ;;  %vm1787_vm12 = vweird.f32 %v2198_v21 }
0x123e   :  { %2036 = vmatmul.msk.f32.vlgmr.msrb.gmra.mxu1 %vm233_vm1, %v1790_v20  ;;  %vm1788_vm14 = vmor %vm1786_vm13, %vm1787_vm12 }
0x123f   :  { %v1782_v24 = vmul.f32 %v2198_v21, %v1781_v23 }
0x1241   :  { %v1783_v27 = vmul.f32 0.5, %v1782_v24 }
0x1243   :  { %v1784_v29 = vsub.f32 1.5, %v1783_v27 }
0x1245   :  { %v1785_v57 = vmul.f32 %v2198_v21, %v1784_v29 }
0x1247   :  { %v1789_v30 = vsel %vm1788_vm14, %v2198_v21, %v1785_v57 }
0x1248   :  { %v1791_v33 = vmul.f32 %v1789_v30, %v3164_v46 }
0x124a   :  { %2037 = vmatmul.msk.f32.gmra.mxu1 %vm233_vm1, %v1791_v33  ;;  %vm1908_vm1 = vcmask 517120  }
0x12bb   :  { %v1829_v12 = vpop.f32.mrf.mxu1 }
0x12bc   :  { %v1830_v28 = vadd.f32 %v2115_v11, %v1829_v12 }
0x12be   :  { %v1835_v40 = vmax.f32 %v1830_v28, 0.0 }
0x12c0   :  { %1875 = vmatmul.f32.vlgmr.msra.gmra.mxu2 %v1835_v40 }
0x12c7   :  { %v1832_v42 = vpop.f32.mrf.mxu1 }
0x12c8   :  { %v1833_v19 = vadd.f32 %v2115_v11, %v1832_v42 }
0x12ca   :  { %v1836_v45 = vmax.f32 %v1833_v19, 0.0 }
0x12cc   :  { %1878 = vmatmul.f32.gmra.mxu2 %v1836_v45 }
0x1343   :  { %v1876_v47 = vpop.f32.mrf.mxu2 }
0x1344   :  { %v1877_v35 = vadd.f32 %v2116_v15, %v1876_v47 }
0x1346   :  { %v1882_v46 = vadd.f32 %v1877_v35, %v3149_v39 }
0x134f   :  { %v1879_v49 = vpop.f32.mrf.mxu2 }
0x1350   :  { %v1880_v48 = vadd.f32 %v2116_v15, %v1879_v49 }
0x1352   :  { %v1883_v25 = vadd.f32 %v1880_v48, %v3155_v44 }
0x1354   :  { %1902 = vmatpush.msra.mxu3 %v1883_v25 }
0x1356   :  { %1903 = vmatpush.msra.mxu3 %v1882_v46 }
0x1357   :  { %2055 = vmatmul.msk.f32.vlgmr.msra.gmra.mxu3 %vm189_vm0, %v1884_v53 }
0x13da   :  { %v1905_v44 = vpop.f32.mrf.mxu3 }
0x13db   :  { %1909 = vst.msk [vmem:[#allocation16] sm:$0x3] %vm1908_vm1, %v1905_v44 }
0x13dc   :  { %1920 = dma.vmem_to_hbm [thread:$0]  %s1916_s2, 32, %s1918_s17, [#allocation4]  }
0x13dd   :  { %2427 = dma.done.wait [#allocation4], 32  }
0x13de   :  { %2428 = vsyncadd [#allocation4], 4294967264 }
0x13df   :  { %1925 = vsyncpa [#allocation3], 1 }
0x13e0   :  { %1926 = vsyncpa [#allocation6], 1 }
0x13e1   :  { %1927 = vsyncpa [#allocation9], 1 }
0x13e2   :  { %1928 = vsyncpa [#allocation12], 1 }
0x13e3   :  { %1929 = vsyncpa [#allocation15], 1 }
0x13e4   :  { %1930 = vsyncpa [#allocation4], 1 }

</bundles_post_ra>
